<compile_context>
chip_gen: v6e
topology: v6e:2x2x1
jax: 0.10.0
libtpu: 0.0.40
codegen_flags: <defaults>
</compile_context>

<pallas_src>
import jax
import jax.numpy as jnp
from jax.experimental import pallas as pl
from jax.experimental.pallas import tpu as pltpu

# ----------------------------- configuration -------------------------------
B = 2               # batch
C = 128             # BEV embed dim (multiple of 128 -> lane-dense in/out)
H = W = 16          # BEV spatial size (toy; production grids are ~200x200)
BN_EPS = 1e-5
MATMUL_DTYPE = jnp.bfloat16   # native MXU dtype on v5e/v6e/v7x; f32 accumulation


# ----------------------------- Pallas kernel --------------------------------
def _downsample_kernel(pee_ref, peo_ref, poe_ref, poo_ref, w_ref, b_ref, o_ref):
    """One batch image per grid step.

    pee/peo/poe/poo: (oh+1, ow+1, C) bf16 parity phase planes of the padded
                     NHWC input (even/odd row x even/odd col).
    w_ref:           (9, C, C) bf16 BN-folded per-tap conv weights (kh*3+kw).
    b_ref:           (1, C) f32 BN-folded bias.
    o_ref:           (oh, ow, C) f32 output block.
    """
    oh, ow, cc = o_ref.shape
    planes = (pee_ref, peo_ref, poe_ref, poo_ref)

    acc = jnp.zeros((oh * ow, cc), jnp.float32)
    # Tap (di, dj) reads padded pixel (2r+di, 2c+dj)  ==  parity plane
    # [2*(di%2) + (dj%2)] at unit-stride window offset (di//2, dj//2).
    for di in range(3):
        for dj in range(3):
            plane = planes[2 * (di % 2) + (dj % 2)]
            r0, c0 = di // 2, dj // 2
            lhs = plane[r0:r0 + oh, c0:c0 + ow, :].reshape(oh * ow, cc)
            acc = acc + jnp.dot(lhs, w_ref[di * 3 + dj],
                                preferred_element_type=jnp.float32)

    y = jnp.maximum(acc + b_ref[...], 0.0)           # folded BN bias + ReLU
    o_ref[...] = y.reshape(oh, ow, cc).astype(o_ref.dtype)


def fused_downsample(phases, w_taps, b_eff, *, batch, oh, ow, cout):
    """phases: 4 x (B, oh+1, ow+1, C) bf16 -> (B, oh, ow, C) f32, one pallas_call."""
    cin = w_taps.shape[1]
    cost = pl.CostEstimate(
        flops=2 * batch * oh * ow * 9 * cin * cout,
        transcendentals=0,
        bytes_accessed=(2 * 4 * batch * (oh + 1) * (ow + 1) * cin   # bf16 phases
                        + 2 * 9 * cin * cout                        # bf16 weights
                        + 4 * cout                                  # f32 bias
                        + 4 * batch * oh * ow * cout),              # f32 output
    )
    plane_spec = pl.BlockSpec((None, oh + 1, ow + 1, cin), lambda b: (b, 0, 0, 0))
    return pl.pallas_call(
        _downsample_kernel,
        out_shape=jax.ShapeDtypeStruct((batch, oh, ow, cout), jnp.float32),
        grid=(batch,),
        in_specs=[
            plane_spec, plane_spec, plane_spec, plane_spec,
            pl.BlockSpec((9, cin, cout), lambda b: (0, 0, 0)),
            pl.BlockSpec((1, cout), lambda b: (0, 0)),
        ],
        out_specs=pl.BlockSpec((None, oh, ow, cout), lambda b: (b, 0, 0, 0)),
        compiler_params=pltpu.CompilerParams(
            dimension_semantics=("parallel",)),      # v7x: one batch per TC
        cost_estimate=cost,
    )(*phases, w_taps, b_eff)


# ----------------------------- JAX glue --------------------------------------
def make_phase_planes(x_nchw):
    """NCHW f32 -> 4 parity phase planes (B, oh+1, ow+1, C) in bf16.

    transpose + pad + parity-slice + cast form one fused XLA pass (~1x input
    bytes) — this replaces the previous 9x im2col materialization entirely.
    """
    x = jnp.transpose(x_nchw, (0, 2, 3, 1))                     # NHWC
    xp = jnp.pad(x, ((0, 0), (1, 1), (1, 1), (0, 0))).astype(MATMUL_DTYPE)
    p_ee = xp[:, 0::2, 0::2, :]
    p_eo = xp[:, 0::2, 1::2, :]
    p_oe = xp[:, 1::2, 0::2, :]
    p_oo = xp[:, 1::2, 1::2, :]
    return (p_ee, p_eo, p_oe, p_oo)


def fold_conv_bn(w_oihw, gamma, beta, mean, var):
    """PyTorch Conv2d weight (Cout, Cin, kh, kw) + eval-mode BN -> (9, Cin, Cout), (1, Cout).

    NOTE: tap t = kh*3 + kw must match the kernel's tap loop order; checkpoint
    weights MUST be permuted OIHW -> (kh, kw, Cin, Cout) exactly as below.
    """
    scale = gamma * jax.lax.rsqrt(var + BN_EPS)                  # (Cout,)
    w_kkio = jnp.transpose(w_oihw, (2, 3, 1, 0))                 # (kh, kw, Cin, Cout)
    w_taps = (w_kkio * scale[None, None, None, :]).reshape(
        9, w_oihw.shape[1], w_oihw.shape[0]).astype(MATMUL_DTYPE)
    b_eff = (beta - mean * scale)[None, :].astype(jnp.float32)   # (1, Cout)
    return w_taps, b_eff


# ----------------------------- full forward ----------------------------------
def img_bev_downsampling(img_bev_embed, params):
    """img_bev_embed: (B, C, H, W) float32 NCHW -> (B, C, H//2, W//2)."""
    # TODO(synk): encoder.downsample is assumed to be Conv2d(C,C,3,2,1)+BN+ReLU
    # (standard BEVFormer encoder downsample); swap folded weights if the
    # deployed checkpoint uses a different stack.
    Bb, Cc, Hh, Ww = img_bev_embed.shape
    assert Hh % 2 == 0 and Ww % 2 == 0, "even BEV grid assumed"
    oh, ow = Hh // 2, Ww // 2
    phases = make_phase_planes(img_bev_embed)
    w_taps, b_eff = fold_conv_bn(params['w_conv'], params['bn_gamma'],
                                 params['bn_beta'], params['bn_mean'],
                                 params['bn_var'])
    y = fused_downsample(phases, w_taps, b_eff,
                         batch=Bb, oh=oh, ow=ow, cout=Cc)        # (B, oh, ow, C)
    # TODO(synk): keep NHWC end-to-end if the downstream consumer allows; this
    # final transpose back to the module's NCHW contract is one extra HBM pass.
    return jnp.transpose(y, (0, 3, 1, 2))


# ----------------------------- pure-JAX reference ----------------------------
def ref_forward(img_bev_embed, params):
    y = jax.lax.conv_general_dilated(
        img_bev_embed, params['w_conv'], window_strides=(2, 2),
        padding=((1, 1), (1, 1)),
        dimension_numbers=('NCHW', 'OIHW', 'NCHW'))
    scale = params['bn_gamma'] / jnp.sqrt(params['bn_var'] + BN_EPS)
    shift = params['bn_beta'] - params['bn_mean'] * scale
    y = y * scale[None, :, None, None] + shift[None, :, None, None]
    return jnp.maximum(y, 0.0)


# ----------------------------- deterministic init ----------------------------
def init_params(key):
    k_w, k_g, k_b, k_m, k_v = jax.random.split(key, 5)
    w = jax.random.normal(k_w, (C, C, 3, 3), jnp.float32) / jnp.sqrt(9.0 * C)
    return dict(
        w_conv=w,                                            # PyTorch OIHW layout
        bn_gamma=jax.random.uniform(k_g, (C,), jnp.float32, 0.5, 1.5),
        bn_beta=jax.random.normal(k_b, (C,), jnp.float32) * 0.1,
        bn_mean=jax.random.normal(k_m, (C,), jnp.float32) * 0.1,
        bn_var=jax.random.uniform(k_v, (C,), jnp.float32, 0.5, 1.5),
    )


if __name__ == "__main__":
    key = jax.random.PRNGKey(0)
    k_x, k_p = jax.random.split(key)
    img_bev_embed = jax.random.normal(k_x, (B, C, H, W), jnp.float32)
    params = init_params(k_p)

    fwd = jax.jit(lambda x: img_bev_downsampling(x, params))
    out = fwd(img_bev_embed)
    jax.block_until_ready(out)

    assert out.shape == (B, C, H // 2, W // 2)
    ref = jax.jit(lambda x: ref_forward(x, params))(img_bev_embed)
    jax.block_until_ready(ref)
    # bf16 MXU inputs (f32 accumulation) vs f32 reference conv.
    assert bool(jnp.allclose(out, ref, atol=3e-2, rtol=3e-2)), "mismatch vs reference"
    print("KERNEL_OK")
</pallas_src>

<mosaic_0001>
module attributes {stable_mosaic.version = 11 : i64} {
  func.func @_downsample_kernel(%arg0: i32, %arg1: memref<1x9x9x128xbf16, #tpu.memory_space<vmem>>, %arg2: memref<1x9x9x128xbf16, #tpu.memory_space<vmem>>, %arg3: memref<1x9x9x128xbf16, #tpu.memory_space<vmem>>, %arg4: memref<1x9x9x128xbf16, #tpu.memory_space<vmem>>, %arg5: memref<9x128x128xbf16, #tpu.memory_space<vmem>>, %arg6: memref<1x128xf32, #tpu.memory_space<vmem>>, %arg7: memref<1x8x8x128xf32, #tpu.memory_space<vmem>>) attributes {dimension_semantics = [#tpu.dimension_semantics<parallel>], iteration_bounds = array<i64: 2>, scalar_prefetch = 0 : i64, scratch_operands = 0 : i64, tpu.core_type = #tpu.core_type<tc>, window_params = [{transform_indices = @transform_0, window_bounds = array<i64: 1, 9, 9, 128>}, {transform_indices = @transform_1, window_bounds = array<i64: 1, 9, 9, 128>}, {transform_indices = @transform_2, window_bounds = array<i64: 1, 9, 9, 128>}, {transform_indices = @transform_3, window_bounds = array<i64: 1, 9, 9, 128>}, {pipeline_mode = #tpu.pipeline_mode<synchronous>, transform_indices = @transform_4, window_bounds = array<i64: 9, 128, 128>}, {pipeline_mode = #tpu.pipeline_mode<synchronous>, transform_indices = @transform_5, window_bounds = array<i64: 1, 128>}, {transform_indices = @transform_6, window_bounds = array<i64: 1, 8, 8, 128>}]} {
    %cst = arith.constant 0.000000e+00 : f32
    %0 = vector.broadcast %cst : f32 to vector<64x128xf32>
    %c0 = arith.constant 0 : index
    %c0_0 = arith.constant 0 : index
    %c0_1 = arith.constant 0 : index
    %c0_2 = arith.constant 0 : index
    %1 = vector.load %arg1[%c0, %c0_0, %c0_1, %c0_2] : memref<1x9x9x128xbf16, #tpu.memory_space<vmem>>, vector<1x8x8x128xbf16>
    %2 = vector.shape_cast %1 : vector<1x8x8x128xbf16> to vector<8x8x128xbf16>
    %3 = vector.shape_cast %2 : vector<8x8x128xbf16> to vector<64x128xbf16>
    %c0_3 = arith.constant 0 : index
    %c0_4 = arith.constant 0 : index
    %c0_5 = arith.constant 0 : index
    %4 = vector.load %arg5[%c0_3, %c0_4, %c0_5] : memref<9x128x128xbf16, #tpu.memory_space<vmem>>, vector<1x128x128xbf16>
    %5 = vector.shape_cast %4 : vector<1x128x128xbf16> to vector<128x128xbf16>
    %cst_6 = arith.constant dense<0.000000e+00> : vector<64x128xf32>
    %6 = tpu.matmul %3, %5, %cst_6 {dimension_numbers = #tpu.dot_dimension_numbers<[1], [0], [0], [1], [0, 0, 1, 1], [], []>} : vector<64x128xbf16>, vector<128x128xbf16>, vector<64x128xf32> -> vector<64x128xf32>
    %7 = arith.addf %0, %6 : vector<64x128xf32>
    %c0_7 = arith.constant 0 : index
    %c0_8 = arith.constant 0 : index
    %c0_9 = arith.constant 0 : index
    %c0_10 = arith.constant 0 : index
    %8 = vector.load %arg2[%c0_7, %c0_8, %c0_9, %c0_10] : memref<1x9x9x128xbf16, #tpu.memory_space<vmem>>, vector<1x8x8x128xbf16>
    %9 = vector.shape_cast %8 : vector<1x8x8x128xbf16> to vector<8x8x128xbf16>
    %10 = vector.shape_cast %9 : vector<8x8x128xbf16> to vector<64x128xbf16>
    %c1 = arith.constant 1 : index
    %c0_11 = arith.constant 0 : index
    %c0_12 = arith.constant 0 : index
    %11 = vector.load %arg5[%c1, %c0_11, %c0_12] : memref<9x128x128xbf16, #tpu.memory_space<vmem>>, vector<1x128x128xbf16>
    %12 = vector.shape_cast %11 : vector<1x128x128xbf16> to vector<128x128xbf16>
    %cst_13 = arith.constant dense<0.000000e+00> : vector<64x128xf32>
    %13 = tpu.matmul %10, %12, %cst_13 {dimension_numbers = #tpu.dot_dimension_numbers<[1], [0], [0], [1], [0, 0, 1, 1], [], []>} : vector<64x128xbf16>, vector<128x128xbf16>, vector<64x128xf32> -> vector<64x128xf32>
    %14 = arith.addf %7, %13 : vector<64x128xf32>
    %c0_14 = arith.constant 0 : index
    %c0_15 = arith.constant 0 : index
    %c1_16 = arith.constant 1 : index
    %c0_17 = arith.constant 0 : index
    %15 = vector.load %arg1[%c0_14, %c0_15, %c1_16, %c0_17] : memref<1x9x9x128xbf16, #tpu.memory_space<vmem>>, vector<1x8x8x128xbf16>
    %16 = vector.shape_cast %15 : vector<1x8x8x128xbf16> to vector<8x8x128xbf16>
    %17 = vector.shape_cast %16 : vector<8x8x128xbf16> to vector<64x128xbf16>
    %c2 = arith.constant 2 : index
    %c0_18 = arith.constant 0 : index
    %c0_19 = arith.constant 0 : index
    %18 = vector.load %arg5[%c2, %c0_18, %c0_19] : memref<9x128x128xbf16, #tpu.memory_space<vmem>>, vector<1x128x128xbf16>
    %19 = vector.shape_cast %18 : vector<1x128x128xbf16> to vector<128x128xbf16>
    %cst_20 = arith.constant dense<0.000000e+00> : vector<64x128xf32>
    %20 = tpu.matmul %17, %19, %cst_20 {dimension_numbers = #tpu.dot_dimension_numbers<[1], [0], [0], [1], [0, 0, 1, 1], [], []>} : vector<64x128xbf16>, vector<128x128xbf16>, vector<64x128xf32> -> vector<64x128xf32>
    %21 = arith.addf %14, %20 : vector<64x128xf32>
    %c0_21 = arith.constant 0 : index
    %c0_22 = arith.constant 0 : index
    %c0_23 = arith.constant 0 : index
    %c0_24 = arith.constant 0 : index
    %22 = vector.load %arg3[%c0_21, %c0_22, %c0_23, %c0_24] : memref<1x9x9x128xbf16, #tpu.memory_space<vmem>>, vector<1x8x8x128xbf16>
    %23 = vector.shape_cast %22 : vector<1x8x8x128xbf16> to vector<8x8x128xbf16>
    %24 = vector.shape_cast %23 : vector<8x8x128xbf16> to vector<64x128xbf16>
    %c3 = arith.constant 3 : index
    %c0_25 = arith.constant 0 : index
    %c0_26 = arith.constant 0 : index
    %25 = vector.load %arg5[%c3, %c0_25, %c0_26] : memref<9x128x128xbf16, #tpu.memory_space<vmem>>, vector<1x128x128xbf16>
    %26 = vector.shape_cast %25 : vector<1x128x128xbf16> to vector<128x128xbf16>
    %cst_27 = arith.constant dense<0.000000e+00> : vector<64x128xf32>
    %27 = tpu.matmul %24, %26, %cst_27 {dimension_numbers = #tpu.dot_dimension_numbers<[1], [0], [0], [1], [0, 0, 1, 1], [], []>} : vector<64x128xbf16>, vector<128x128xbf16>, vector<64x128xf32> -> vector<64x128xf32>
    %28 = arith.addf %21, %27 : vector<64x128xf32>
    %c0_28 = arith.constant 0 : index
    %c0_29 = arith.constant 0 : index
    %c0_30 = arith.constant 0 : index
    %c0_31 = arith.constant 0 : index
    %29 = vector.load %arg4[%c0_28, %c0_29, %c0_30, %c0_31] : memref<1x9x9x128xbf16, #tpu.memory_space<vmem>>, vector<1x8x8x128xbf16>
    %30 = vector.shape_cast %29 : vector<1x8x8x128xbf16> to vector<8x8x128xbf16>
    %31 = vector.shape_cast %30 : vector<8x8x128xbf16> to vector<64x128xbf16>
    %c4 = arith.constant 4 : index
    %c0_32 = arith.constant 0 : index
    %c0_33 = arith.constant 0 : index
    %32 = vector.load %arg5[%c4, %c0_32, %c0_33] : memref<9x128x128xbf16, #tpu.memory_space<vmem>>, vector<1x128x128xbf16>
    %33 = vector.shape_cast %32 : vector<1x128x128xbf16> to vector<128x128xbf16>
    %cst_34 = arith.constant dense<0.000000e+00> : vector<64x128xf32>
    %34 = tpu.matmul %31, %33, %cst_34 {dimension_numbers = #tpu.dot_dimension_numbers<[1], [0], [0], [1], [0, 0, 1, 1], [], []>} : vector<64x128xbf16>, vector<128x128xbf16>, vector<64x128xf32> -> vector<64x128xf32>
    %35 = arith.addf %28, %34 : vector<64x128xf32>
    %c0_35 = arith.constant 0 : index
    %c0_36 = arith.constant 0 : index
    %c1_37 = arith.constant 1 : index
    %c0_38 = arith.constant 0 : index
    %36 = vector.load %arg3[%c0_35, %c0_36, %c1_37, %c0_38] : memref<1x9x9x128xbf16, #tpu.memory_space<vmem>>, vector<1x8x8x128xbf16>
    %37 = vector.shape_cast %36 : vector<1x8x8x128xbf16> to vector<8x8x128xbf16>
    %38 = vector.shape_cast %37 : vector<8x8x128xbf16> to vector<64x128xbf16>
    %c5 = arith.constant 5 : index
    %c0_39 = arith.constant 0 : index
    %c0_40 = arith.constant 0 : index
    %39 = vector.load %arg5[%c5, %c0_39, %c0_40] : memref<9x128x128xbf16, #tpu.memory_space<vmem>>, vector<1x128x128xbf16>
    %40 = vector.shape_cast %39 : vector<1x128x128xbf16> to vector<128x128xbf16>
    %cst_41 = arith.constant dense<0.000000e+00> : vector<64x128xf32>
    %41 = tpu.matmul %38, %40, %cst_41 {dimension_numbers = #tpu.dot_dimension_numbers<[1], [0], [0], [1], [0, 0, 1, 1], [], []>} : vector<64x128xbf16>, vector<128x128xbf16>, vector<64x128xf32> -> vector<64x128xf32>
    %42 = arith.addf %35, %41 : vector<64x128xf32>
    %c0_42 = arith.constant 0 : index
    %c1_43 = arith.constant 1 : index
    %c0_44 = arith.constant 0 : index
    %c0_45 = arith.constant 0 : index
    %43 = vector.load %arg1[%c0_42, %c1_43, %c0_44, %c0_45] : memref<1x9x9x128xbf16, #tpu.memory_space<vmem>>, vector<1x8x8x128xbf16>
    %44 = vector.shape_cast %43 : vector<1x8x8x128xbf16> to vector<8x8x128xbf16>
    %45 = vector.shape_cast %44 : vector<8x8x128xbf16> to vector<64x128xbf16>
    %c6 = arith.constant 6 : index
    %c0_46 = arith.constant 0 : index
    %c0_47 = arith.constant 0 : index
    %46 = vector.load %arg5[%c6, %c0_46, %c0_47] : memref<9x128x128xbf16, #tpu.memory_space<vmem>>, vector<1x128x128xbf16>
    %47 = vector.shape_cast %46 : vector<1x128x128xbf16> to vector<128x128xbf16>
    %cst_48 = arith.constant dense<0.000000e+00> : vector<64x128xf32>
    %48 = tpu.matmul %45, %47, %cst_48 {dimension_numbers = #tpu.dot_dimension_numbers<[1], [0], [0], [1], [0, 0, 1, 1], [], []>} : vector<64x128xbf16>, vector<128x128xbf16>, vector<64x128xf32> -> vector<64x128xf32>
    %49 = arith.addf %42, %48 : vector<64x128xf32>
    %c0_49 = arith.constant 0 : index
    %c1_50 = arith.constant 1 : index
    %c0_51 = arith.constant 0 : index
    %c0_52 = arith.constant 0 : index
    %50 = vector.load %arg2[%c0_49, %c1_50, %c0_51, %c0_52] : memref<1x9x9x128xbf16, #tpu.memory_space<vmem>>, vector<1x8x8x128xbf16>
    %51 = vector.shape_cast %50 : vector<1x8x8x128xbf16> to vector<8x8x128xbf16>
    %52 = vector.shape_cast %51 : vector<8x8x128xbf16> to vector<64x128xbf16>
    %c7 = arith.constant 7 : index
    %c0_53 = arith.constant 0 : index
    %c0_54 = arith.constant 0 : index
    %53 = vector.load %arg5[%c7, %c0_53, %c0_54] : memref<9x128x128xbf16, #tpu.memory_space<vmem>>, vector<1x128x128xbf16>
    %54 = vector.shape_cast %53 : vector<1x128x128xbf16> to vector<128x128xbf16>
    %cst_55 = arith.constant dense<0.000000e+00> : vector<64x128xf32>
    %55 = tpu.matmul %52, %54, %cst_55 {dimension_numbers = #tpu.dot_dimension_numbers<[1], [0], [0], [1], [0, 0, 1, 1], [], []>} : vector<64x128xbf16>, vector<128x128xbf16>, vector<64x128xf32> -> vector<64x128xf32>
    %56 = arith.addf %49, %55 : vector<64x128xf32>
    %c0_56 = arith.constant 0 : index
    %c1_57 = arith.constant 1 : index
    %c1_58 = arith.constant 1 : index
    %c0_59 = arith.constant 0 : index
    %57 = vector.load %arg1[%c0_56, %c1_57, %c1_58, %c0_59] : memref<1x9x9x128xbf16, #tpu.memory_space<vmem>>, vector<1x8x8x128xbf16>
    %58 = vector.shape_cast %57 : vector<1x8x8x128xbf16> to vector<8x8x128xbf16>
    %59 = vector.shape_cast %58 : vector<8x8x128xbf16> to vector<64x128xbf16>
    %c8 = arith.constant 8 : index
    %c0_60 = arith.constant 0 : index
    %c0_61 = arith.constant 0 : index
    %60 = vector.load %arg5[%c8, %c0_60, %c0_61] : memref<9x128x128xbf16, #tpu.memory_space<vmem>>, vector<1x128x128xbf16>
    %61 = vector.shape_cast %60 : vector<1x128x128xbf16> to vector<128x128xbf16>
    %cst_62 = arith.constant dense<0.000000e+00> : vector<64x128xf32>
    %62 = tpu.matmul %59, %61, %cst_62 {dimension_numbers = #tpu.dot_dimension_numbers<[1], [0], [0], [1], [0, 0, 1, 1], [], []>} : vector<64x128xbf16>, vector<128x128xbf16>, vector<64x128xf32> -> vector<64x128xf32>
    %63 = arith.addf %56, %62 : vector<64x128xf32>
    %c0_63 = arith.constant 0 : index
    %c0_64 = arith.constant 0 : index
    %64 = vector.load %arg6[%c0_63, %c0_64] : memref<1x128xf32, #tpu.memory_space<vmem>>, vector<1x128xf32>
    %65 = vector.broadcast %64 : vector<1x128xf32> to vector<64x128xf32>
    %66 = arith.addf %63, %65 : vector<64x128xf32>
    %cst_65 = arith.constant 0.000000e+00 : f32
    %67 = vector.broadcast %cst_65 : f32 to vector<64x128xf32>
    %68 = arith.maximumf %66, %67 : vector<64x128xf32>
    %69 = vector.shape_cast %68 : vector<64x128xf32> to vector<8x8x128xf32>
    %c0_66 = arith.constant 0 : index
    %c0_67 = arith.constant 0 : index
    %c0_68 = arith.constant 0 : index
    %c0_69 = arith.constant 0 : index
    %70 = vector.load %arg7[%c0_66, %c0_67, %c0_68, %c0_69] : memref<1x8x8x128xf32, #tpu.memory_space<vmem>>, vector<1x8x8x128xf32>
    %71 = vector.shape_cast %70 : vector<1x8x8x128xf32> to vector<8x8x128xf32>
    %72 = vector.shape_cast %69 : vector<8x8x128xf32> to vector<1x8x8x128xf32>
    tpu.vector_store %arg7[%c0_66, %c0_67, %c0_68, %c0_69], %72 {strides = array<i32>} : memref<1x8x8x128xf32, #tpu.memory_space<vmem>>, vector<1x8x8x128xf32>,
    return
  }
  func.func @transform_0(%arg0: i32) -> (i32, i32, i32, i32) {
    %c0_i32 = arith.constant 0 : i32
    %c0_i32_0 = arith.constant 0 : i32
    %c0_i32_1 = arith.constant 0 : i32
    %c0_i32_2 = arith.constant 0 : i32
    return %arg0, %c0_i32, %c0_i32_0, %c0_i32_1 : i32, i32, i32, i32
  }
  func.func @transform_1(%arg0: i32) -> (i32, i32, i32, i32) {
    %c0_i32 = arith.constant 0 : i32
    %c0_i32_0 = arith.constant 0 : i32
    %c0_i32_1 = arith.constant 0 : i32
    %c0_i32_2 = arith.constant 0 : i32
    return %arg0, %c0_i32, %c0_i32_0, %c0_i32_1 : i32, i32, i32, i32
  }
  func.func @transform_2(%arg0: i32) -> (i32, i32, i32, i32) {
    %c0_i32 = arith.constant 0 : i32
    %c0_i32_0 = arith.constant 0 : i32
    %c0_i32_1 = arith.constant 0 : i32
    %c0_i32_2 = arith.constant 0 : i32
    return %arg0, %c0_i32, %c0_i32_0, %c0_i32_1 : i32, i32, i32, i32
  }
  func.func @transform_3(%arg0: i32) -> (i32, i32, i32, i32) {
    %c0_i32 = arith.constant 0 : i32
    %c0_i32_0 = arith.constant 0 : i32
    %c0_i32_1 = arith.constant 0 : i32
    %c0_i32_2 = arith.constant 0 : i32
    return %arg0, %c0_i32, %c0_i32_0, %c0_i32_1 : i32, i32, i32, i32
  }
  func.func @transform_4(%arg0: i32) -> (i32, i32, i32) {
    %c0_i32 = arith.constant 0 : i32
    %c0_i32_0 = arith.constant 0 : i32
    %c0_i32_1 = arith.constant 0 : i32
    %c0_i32_2 = arith.constant 0 : i32
    return %c0_i32, %c0_i32_0, %c0_i32_1 : i32, i32, i32
  }
  func.func @transform_5(%arg0: i32) -> (i32, i32) {
    %c0_i32 = arith.constant 0 : i32
    %c0_i32_0 = arith.constant 0 : i32
    %c0_i32_1 = arith.constant 0 : i32
    return %c0_i32, %c0_i32_0 : i32, i32
  }
  func.func @transform_6(%arg0: i32) -> (i32, i32, i32, i32) {
    %c0_i32 = arith.constant 0 : i32
    %c0_i32_0 = arith.constant 0 : i32
    %c0_i32_1 = arith.constant 0 : i32
    %c0_i32_2 = arith.constant 0 : i32
    return %arg0, %c0_i32, %c0_i32_0, %c0_i32_1 : i32, i32, i32, i32
  }
}

</mosaic_0001>

<bundles_post_ra>
// kernel: _lambda_.1
= control target key start
LH: loop header
LB: loop body
LE: loop exit
PB: predicated region body
PF: predicated region fallthrough
CT: control target
= control target key end

     0   :  { %11 = vsyncpa [#allocation3], 0  ;;  %s3659_s0 = inlined_call_operand.vmem [shape: bf16[2,9,9,128], index: 0, kind: input, shape index: {}]   ;;  %s3660_s1 = inlined_call_operand.vmem [shape: bf16[2,9,9,128], index: 1, kind: input, shape index: {}]   ;;  %s3661_s2 = inlined_call_operand.vmem [shape: bf16[2,9,9,128], index: 2, kind: input, shape index: {}]   ;;  %s3662_s3 = inlined_call_operand.vmem [shape: bf16[2,9,9,128], index: 3, kind: input, shape index: {}]   ;;  %s3663_s4 = inlined_call_operand.vmem [shape: bf16[9,128,128], index: 4, kind: input, shape index: {}]   ;;  %s3664_s5 = inlined_call_operand.vmem [shape: f32[1,128], index: 5, kind: input, shape index: {}]   ;;  %s3665_s6 = inlined_call_operand.hbm [shape: f32[2,8,8,128], index: 6, kind: output, shape index: {}]  }
   0x1   :  { %13 = vsyncpa [#allocation3 + $0x1], 0  ;;  %s3170_s21 = smov 0   ;;  %s3172_s22 = smov 0  }
   0x2   :  { %s3174_s23 = smov 0   ;;  %s3176_s24 = smov 0  }
   0x3 LB: > { %s3191_s25 = sadd.s32 4294967295, %s3130_s24   ;;  %s2308_s26 = sadd.s32 4294967294, %s3130_s24   ;;  %s3130_s24 = sphi %s3176_s24, %s3681_s24   ;;  %s3126_s23 = sphi %s3174_s23, %s3680_s23   ;;  %s3122_s22 = sphi %s3172_s22, %s3679_s22   ;;  %s3118_s21 = sphi %s3170_s21, %s3678_s21  }
   0x4   : > { %s3195_s27 = sadd.s32 1, %s3130_s24   ;;  %s172_s28 = sadd.s32 1, %s3126_s23 }
   0x5   : > { %s169_s29 = ssub.s32 %s3130_s24, %s3195_s27  ;;  %p182_p0 = scmp.ne.s32.totalorder %s3126_s23, %s3122_s22 }
   0x6   : > { %p170_p1 = scmp.eq.s32.totalorder %s169_s29, 0  ;;  %p183_p2 = scmp.eq.s32.totalorder %s3191_s25, 1 }
   0x7   : > { %p188_p3 = scmp.ne.s32.totalorder %s3122_s22, %s3118_s21  ;;  %p189_p4 = scmp.eq.s32.totalorder %s2308_s26, 1 }
   0x8   : > { %s3206_s30 = scalar_select %p170_p1, %s3126_s23, %s172_s28  }
   0x9   : > { %p3208_p5 = por %p183_p2, %p182_p0  ;;  %p3212_p6 = por %p189_p4, %p188_p3 }
   0xa   : > { %p2311_p7 = scmp.ge.s32.totalorder %s3130_s24, 1  ;;  %p245_p8 = scmp.lt.s32.totalorder %s3130_s24, 3 }
   0xc   : > { %p246_p9 = pnand %p2311_p7, %p245_p8 }
   0xe   : > { %249 = sbr.rel (%p246_p9) target bundleno = 400 (0x190), region = 44 }
  0x13   : > { %v2974_v0 = vld [vmem:[%s3663_s4 + $0x78] sm:$0xff]   ;;  %p290_p10 = scmp.lt.s32.totalorder %s3191_s25, 1  ;;  %v2976_v2 = vld [vmem:[%s3663_s4 + $0x70] sm:$0xff]   ;;  %v2978_v4 = vld [vmem:[%s3663_s4 + $0x68] sm:$0xff]   ;;  %vm650_vm0 = vsmask.f32 3328 }
  0x14   : > { %v2975_v1 = vld [vmem:[%s3663_s4 + $0x38] sm:$0xff]   ;;  %2700 = vmatprep.subr.bf16.mxu0 %v2974_v0  ;;  %v2977_v3 = vld [vmem:[%s3663_s4 + $0x30] sm:$0xff]   ;;  %v2979_v5 = vld [vmem:[%s3663_s4 + $0x28] sm:$0xff]   ;;  %vm651_vm1 = vsmask.f32 7440  ;;  %s287_s17 = sand.u32 1, %s3122_s22  }
  0x15   : > { %2724 = vmatprep.subr.bf16.mxu1 %v2975_v1  ;;  %2701 = vmatpush3.bf16.msra.mxu0 %v2974_v0  ;;  %s291_s26 = scalar_select %p290_p10, %s3191_s25, 1  ;;  %v2980_v6 = vld [vmem:[%s3663_s4 + $0x60] sm:$0xff]   ;;  %v2982_v8 = vld [vmem:[%s3663_s4 + $0x58] sm:$0xff]   ;;  %v2984_v10 = vld [vmem:[%s3663_s4 + $0x50] sm:$0xff]  }
  0x16   : > { %2725 = vmatpush3.bf16.msra.mxu1 %v2975_v1  ;;  %2702 = vmatprep.subr.bf16.mxu0 %v2976_v2  ;;  %v2981_v7 = vld [vmem:[%s3663_s4 + $0x20] sm:$0xff]   ;;  %v2983_v9 = vld [vmem:[%s3663_s4 + $0x18] sm:$0xff]   ;;  %v2985_v11 = vld [vmem:[%s3663_s4 + $0x10] sm:$0xff]   ;;  %s2312_s20 = sshll.u32 %s287_s17, 6  ;;  %s2591_s28 = sshll.u32 %s3191_s25, 10 }
  0x17   : > { %2726 = vmatprep.subr.bf16.mxu1 %v2977_v3  ;;  %s3244_s11 = smul.u32 72, %s291_s26  ;;  %v2986_v14 = vld [vmem:[%s3663_s4 + $0x48] sm:$0xff]   ;;  %v2988_v16 = vld [vmem:[%s3663_s4 + $0x40] sm:$0xff]   ;;  %v2994_v19 = vld [vmem:[%s3663_s4 + $0xb8] sm:$0xff]   ;;  %s289_s26 = scalar_lea.vmem [#allocation2], %s2312_s20 }
  0x18   : > { %v2987_v15 = vld [vmem:[%s3663_s4 + $0x8] sm:$0xff]   ;;  %v2989_v17 = vld [vmem:[%s3663_s4] sm:$0xff]   ;;  %v2995_v20 = vld [vmem:[%s3663_s4 + $0xf8] sm:$0xff]   ;;  %s2210_s9 = sshll.u32 %s289_s26, 4  ;;  %s3613_s13 = scalar_lea.hbm %s3665_s6, %s2591_s28  ;;  %s3615_s9 = int_to_ptr.vmem [resolvable:$true] %s2210_s9 }
  0x19   : > { %2703 = vmatpush3.bf16.msra.mxu0 %v2976_v2  ;;  %s3256_s18 = scalar_lea.vmem %s3660_s1, %s3244_s11  ;;  %s3265_s29 = scalar_lea.vmem %s3659_s0, %s3244_s11  ;;  %v2996_v22 = vld [vmem:[%s3663_s4 + $0xb0] sm:$0xff]   ;;  %v2998_v26 = vld [vmem:[%s3663_s4 + $0xa8] sm:$0xff]   ;;  %v3000_v28 = vld [vmem:[%s3663_s4 + $0xa0] sm:$0xff]  }
  0x1a   : > { %2727 = vmatpush3.bf16.msra.mxu1 %v2977_v3  ;;  %2704 = vmatprep.subr.bf16.mxu0 %v2978_v4  ;;  %v2990_v12 = vld [vmem:[%s3256_s18] ss:$8 sps:$4 sm:$0xff]   ;;  %v2992_v18 = vld [vmem:[%s3256_s18 + $0x10] ss:$8 sps:$4 sm:$0xff]   ;;  %s3318_s14 = scalar_lea.vmem %s3661_s2, %s3244_s11  ;;  %v635_v33 = vld [vmem:[%s3265_s29 + $0x4] sm:$0x1]  ;;  %s3411_s10 = scalar_lea.vmem %s3662_s3, %s3244_s11 }
  0x1b   : > { %2728 = vmatprep.subr.bf16.mxu1 %v2979_v5  ;;  %v2991_v13 = vld [vmem:[%s3265_s29] ss:$8 sps:$4 sm:$0xff]   ;;  %2716 = vmatprep.mubr.bf16.mxu0 %v2990_v12  ;;  %v2993_v21 = vld [vmem:[%s3265_s29 + $0x10] ss:$8 sps:$4 sm:$0xff]   ;;  %v637_v35 = vld [vmem:[%s3265_s29 + $0xc] sm:$0x1] }
  0x1c   : > { %2740 = vmatprep.mubr.bf16.mxu1 %v2991_v13  ;;  %v2997_v23 = vld [vmem:[%s3663_s4 + $0xf0] sm:$0xff]   ;;  %v3004_v24 = vld [vmem:[%s3256_s18 + $0x20] ss:$8 sps:$4 sm:$0xff]   ;;  %v3002_v36 = vld [vmem:[%s3663_s4 + $0x98] sm:$0xff]   ;;  %v663_v39 = vshll.u32 %v635_v33, 16  ;;  %v677_v42 = vshll.u32 %v637_v35, 16 }
  0x1d   : > { %2705 = vmatpush3.bf16.msra.mxu0 %v2978_v4  ;;  %v3005_v25 = vld [vmem:[%s3265_s29 + $0x20] ss:$8 sps:$4 sm:$0xff]   ;;  %v3006_v29 = vld [vmem:[%s3256_s18 + $0x30] ss:$8 sps:$4 sm:$0xff]   ;;  %v639_v51 = vld [vmem:[%s3265_s29 + $0x14] sm:$0x1] }
  0x1e   : > { %2729 = vmatpush3.bf16.msra.mxu1 %v2979_v5  ;;  %2706 = vmatprep.subr.bf16.mxu0 %v2980_v6  ;;  %v2999_v27 = vld [vmem:[%s3663_s4 + $0xe8] sm:$0xff]   ;;  %v3001_v30 = vld [vmem:[%s3663_s4 + $0xe0] sm:$0xff]   ;;  %v3007_v31 = vld [vmem:[%s3265_s29 + $0x30] ss:$8 sps:$4 sm:$0xff]   ;;  %v665_v49 = vrot.slane %v663_v39, 5  ;;  %v691_v57 = vshll.u32 %v639_v51, 16 }
  0x1f   : > { %2730 = vmatprep.subr.bf16.mxu1 %v2981_v7  ;;  %v634_v32 = vld [vmem:[%s3265_s29] sm:$0xf]  ;;  %v636_v34 = vld [vmem:[%s3265_s29 + $0x8] sm:$0xf]  ;;  %v3003_v44 = vld [vmem:[%s3663_s4 + $0xd8] sm:$0xff]   ;;  %v679_v61 = vrot.slane %v677_v42, 5 }
  0x20   : > { %v654_v37 = vshrl.u32 %v634_v32, 16  ;;  %v657_v38 = vshll.u32 %v634_v32, 16  ;;  %v668_v40 = vshrl.u32 %v636_v34, 16  ;;  %v671_v41 = vshll.u32 %v636_v34, 16  ;;  %v3014_v43 = vld [vmem:[%s3318_s14] ss:$8 sps:$4 sm:$0xff]   ;;  %vm3340_vm2 = vmor %vm650_vm0, %vm651_vm1 }
  0x21   : > { %2707 = vmatpush3.bf16.msra.mxu0 %v2980_v6  ;;  %v638_v48 = vld [vmem:[%s3265_s29 + $0x10] sm:$0xf]  ;;  %v640_v52 = vld [vmem:[%s3265_s29 + $0x18] sm:$0xf]  ;;  %v641_v54 = vld [vmem:[%s3265_s29 + $0x1c] sm:$0x1] }
  0x22   : > { %2731 = vmatpush3.bf16.msra.mxu1 %v2981_v7  ;;  %2708 = vmatprep.subr.bf16.mxu0 %v2982_v8  ;;  %v656_v45 = vrot.slane %v654_v37, 4  ;;  %v659_v46 = vrot.slane %v657_v38, 5  ;;  %v670_v47 = vrot.slane %v668_v40, 4  ;;  %v673_v50 = vrot.slane %v671_v41, 5  ;;  %v3008_v58 = vld [vmem:[%s3663_s4 + $0x90] sm:$0xff]   ;;  %v3016_v51 = vld [vmem:[%s3663_s4 + $0x138] sm:$0xff]  }
  0x23   : > { %2732 = vmatprep.subr.bf16.mxu1 %v2983_v9  ;;  %v682_v55 = vshrl.u32 %v638_v48, 16  ;;  %v685_v56 = vshll.u32 %v638_v48, 16  ;;  %v696_v62 = vshrl.u32 %v640_v52, 16  ;;  %v699_v63 = vshll.u32 %v640_v52, 16  ;;  %v3009_v4 = vld [vmem:[%s3663_s4 + $0xd0] sm:$0xff]   ;;  %s3619_s25 = scalar_lea.sflag [#allocation3], %s287_s17 }
  0x24   : > { %v660_v53 = vor.u32 %v659_v46, %v656_v45  ;;  %v674_v60 = vor.u32 %v673_v50, %v670_v47  ;;  %v705_v3 = vshll.u32 %v641_v54, 16  ;;  %v3347_v6 = vrot.slane %v691_v57, 5  ;;  %v648_v40 = vld [vmem:[%s3265_s29 + $0x38] sm:$0xf]  ;;  %s3132_s15 = smov [#allocation2]  }
  0x25   : > { %2709 = vmatpush3.bf16.msra.mxu0 %v2982_v8  ;;  %v684_v1 = vrot.slane %v682_v55, 4  ;;  %v687_v2 = vrot.slane %v685_v56, 5  ;;  %v698_v7 = vrot.slane %v696_v62, 4  ;;  %v701_v8 = vrot.slane %v699_v63, 5  ;;  %v3017_v55 = vld [vmem:[%s3663_s4 + $0x178] sm:$0xff]   ;;  %s3074_s16 = sshll.u32 %s3132_s15, 4  ;;  %s3075_s16 = int_to_ptr.vmem [resolvable:$false] %s3074_s16 }
  0x26   : > { %2733 = vmatpush3.bf16.msra.mxu1 %v2983_v9  ;;  %2710 = vmatprep.subr.bf16.mxu0 %v2984_v10  ;;  %v661_v0 = vrot.slane %v660_v53, 4  ;;  %v675_v5 = vrot.slane %v674_v60, 4  ;;  %v3010_v9 = vld [vmem:[%s3663_s4 + $0x88] sm:$0xff]   ;;  %v755_v50 = vshll.u32 %v648_v40, 16  ;;  %p3077_p0 = scmp.lt.s32.totalorder %s3615_s9, %s3075_s16 }
  0x27   : > { %2734 = vmatprep.subr.bf16.mxu1 %v2985_v11  ;;  %v702_v13 = vor.u32 %v701_v8, %v698_v7  ;;  %v3019_v7 = vld [vmem:[%s3663_s4 + $0x170] sm:$0xff]  }
  0x28   : > { %v680_v12 = vsel %vm3340_vm2, %v675_v5, %v679_v61  ;;  %v3015_v61 = vld [vmem:[%s3318_s14 + $0x10] ss:$8 sps:$4 sm:$0xff]  }
  0x29   : > { %2711 = vmatpush3.bf16.msra.mxu0 %v2984_v10  ;;  %v666_v10 = vsel %vm3340_vm2, %v661_v0, %v665_v49  ;;  %v752_v49 = vshrl.u32 %v648_v40, 16  ;;  %v1264_v40 = vld [vmem:[%s3318_s14 + $0x14] sm:$0x1] }
  0x2a   : > { %2735 = vmatpush3.bf16.msra.mxu1 %v2985_v11  ;;  %2712 = vmatprep.subr.bf16.mxu0 %v2986_v14  ;;  %v688_v11 = vor.u32 %v687_v2, %v684_v1 }
  0x2b   : > { %2736 = vmatprep.subr.bf16.mxu1 %v2987_v15  ;;  %v754_v57 = vrot.slane %v752_v49, 4 }
  0x2d   : > { %2713 = vmatpush3.bf16.msra.mxu0 %v2986_v14  ;;  %v2373_v14 = vcombine.low %v666_v10, %v680_v12  ;;  %v3020_v10 = vld [vmem:[%s3663_s4 + $0x128] sm:$0xff]  }
  0x2e   : > { %2737 = vmatpush3.bf16.msra.mxu1 %v2987_v15  ;;  %2714 = vmatprep.subr.bf16.mxu0 %v2988_v16  ;;  %v689_v15 = vrot.slane %v688_v11, 4 }
  0x2f   : > { %2738 = vmatprep.subr.bf16.mxu1 %v2989_v17 }
  0x31   : > { %2715 = vmatpush3.bf16.msra.mxu0 %v2988_v16  ;;  %v707_v16 = vrot.slane %v705_v3, 5 }
  0x32   : > { %2739 = vmatpush3.bf16.msra.mxu1 %v2989_v17  ;;  %2748 = vmatprep.subr.bf16.mxu0 %v2994_v19  ;;  %v3011_v17 = vld [vmem:[%s3663_s4 + $0xc8] sm:$0xff]  }
  0x33   : > { %2772 = vmatprep.subr.bf16.mxu1 %v2995_v20 }
  0x34   : > { %2717 = vmatmul.mubr.bf16.vlgmr.msra.gmra.mxu0 %v2992_v18  ;;  %v703_v18 = vrot.slane %v702_v13, 4  ;;  %v3021_v13 = vld [vmem:[%s3663_s4 + $0x168] sm:$0xff]  }
  0x35   : > { %2741 = vmatmul.mubr.bf16.vlgmr.msra.gmra.mxu1 %v2993_v21  ;;  %2749 = vmatpush3.bf16.msra.mxu0 %v2994_v19  ;;  %v642_v19 = vld [vmem:[%s3265_s29 + $0x20] sm:$0xf]  ;;  %v644_v21 = vld [vmem:[%s3265_s29 + $0x28] sm:$0xf] }
  0x36   : > { %2773 = vmatpush3.bf16.msra.mxu1 %v2995_v20  ;;  %2750 = vmatprep.subr.bf16.mxu0 %v2996_v22  ;;  %v643_v20 = vld [vmem:[%s3265_s29 + $0x24] sm:$0x1]  ;;  %v708_v32 = vsel %vm3340_vm2, %v703_v18, %v707_v16  ;;  %v3026_v18 = vld [vmem:[%s3663_s4 + $0x118] sm:$0xff]  }
  0x37   : > { %2774 = vmatprep.subr.bf16.mxu1 %v2997_v23  ;;  %2720 = vmatprep.mubr.bf16.mxu0 %v3004_v24  ;;  %v713_v24 = vshll.u32 %v642_v19, 16  ;;  %v3024_v16 = vld [vmem:[%s3663_s4 + $0x120] sm:$0xff]  }
  0x38   : > { %2744 = vmatprep.mubr.bf16.mxu1 %v3005_v25  ;;  %v3012_v25 = vld [vmem:[%s3663_s4 + $0x80] sm:$0xff]  }
  0x39   : > { %2751 = vmatpush3.bf16.msra.mxu0 %v2996_v22  ;;  %v645_v22 = vld [vmem:[%s3265_s29 + $0x2c] sm:$0x1]  ;;  %v715_v34 = vrot.slane %v713_v24, 5 }
  0x3a   : > { %2775 = vmatpush3.bf16.msra.mxu1 %v2997_v23  ;;  %2752 = vmatprep.subr.bf16.mxu0 %v2998_v26  ;;  %v710_v23 = vshrl.u32 %v642_v19, 16  ;;  %v733_v35 = vshll.u32 %v645_v22, 16  ;;  %v3034_v19 = vld [vmem:[%s3411_s10] ss:$8 sps:$4 sm:$0xff]  }
  0x3b   : > { %2776 = vmatprep.subr.bf16.mxu1 %v2999_v27  ;;  %v1261_v22 = vld [vmem:[%s3318_s14 + $0x8] sm:$0xf] }
  0x3c   : > { %2721 = vmatmul.mubr.bf16.gmra.mxu0 %v3006_v29  ;;  %v727_v29 = vshll.u32 %v644_v21, 16  ;;  %v712_v33 = vrot.slane %v710_v23, 4  ;;  %v1262_v23 = vld [vmem:[%s3318_s14 + $0xc] sm:$0x1] }
  0x3d   : > { %2753 = vmatpush3.bf16.msra.mxu0 %v2998_v26  ;;  %2745 = vmatmul.mubr.bf16.gmra.mxu1 %v3007_v31  ;;  %v694_v26 = vsel %vm3340_vm2, %v689_v15, %v3347_v6  ;;  %v3013_v31 = vld [vmem:[%s3663_s4 + $0xc0] sm:$0xff]   ;;  %v3023_v15 = vld [vmem:[%s3318_s14 + $0x30] ss:$8 sps:$4 sm:$0xff]  }
  0x3e   : > { %2777 = vmatpush3.bf16.msra.mxu1 %v2999_v27  ;;  %2754 = vmatprep.subr.bf16.mxu0 %v3000_v28  ;;  %v719_v27 = vshll.u32 %v643_v20, 16  ;;  %v729_v39 = vrot.slane %v727_v29, 5  ;;  %v716_v42 = vor.u32 %v715_v34, %v712_v33  ;;  %v2374_v60 = vcombine.low %v694_v26, %v708_v32  ;;  %v3022_v6 = vld [vmem:[%s3318_s14 + $0x20] ss:$8 sps:$4 sm:$0xff]   ;;  %v3028_v33 = vld [vmem:[%s3663_s4 + $0x110] sm:$0xff]  }
  0x3f   : > { %2778 = vmatprep.subr.bf16.mxu1 %v3001_v30  ;;  %2788 = vmatprep.mubr.bf16.mxu1 %v3014_v43  ;;  %v735_v43 = vrot.slane %v733_v35, 5  ;;  %v1259_v20 = vld [vmem:[%s3318_s14] sm:$0xf]  ;;  %v1299_v29 = vshll.u32 %v1262_v23, 16  ;;  %v1271_v23 = vld [vmem:[%s3318_s14 + $0x30] sm:$0xf] }
  0x40   : > { %2764 = vmatprep.mubr.bf16.mxu0 %v2373_v14  ;;  %v721_v37 = vrot.slane %v719_v27, 5  ;;  %v717_v52 = vrot.slane %v716_v42, 4  ;;  %v1276_v24 = vshrl.u32 %v1259_v20, 16  ;;  %v1290_v27 = vshrl.u32 %v1261_v22, 16  ;;  %v1266_v42 = vld [vmem:[%s3318_s14 + $0x1c] sm:$0x1] }
  0x41   : > { %2755 = vmatpush3.bf16.msra.mxu0 %v3000_v28  ;;  %v724_v28 = vshrl.u32 %v644_v21, 16  ;;  %v1260_v21 = vld [vmem:[%s3318_s14 + $0x4] sm:$0x1] }
  0x42   : > { %2779 = vmatpush3.bf16.msra.mxu1 %v3001_v30  ;;  %2756 = vmatprep.subr.bf16.mxu0 %v3002_v36  ;;  %v646_v30 = vld [vmem:[%s3265_s29 + $0x30] sm:$0xf]  ;;  %v722_v62 = vsel %vm3340_vm2, %v717_v52, %v721_v37  ;;  %v1285_v26 = vshll.u32 %v1260_v21, 16  ;;  %v1292_v35 = vrot.slane %v1290_v27, 4  ;;  %v1301_v37 = vrot.slane %v1299_v29, 5 }
  0x43   : > { %2780 = vmatprep.subr.bf16.mxu1 %v3003_v44  ;;  %v726_v38 = vrot.slane %v724_v28, 4  ;;  %v738_v41 = vshrl.u32 %v646_v30, 16  ;;  %v741_v45 = vshll.u32 %v646_v30, 16  ;;  %v1293_v28 = vshll.u32 %v1261_v22, 16  ;;  %v3027_v30 = vld [vmem:[%s3663_s4 + $0x158] sm:$0xff]  }
  0x44   : > { %v1287_v34 = vrot.slane %v1285_v26, 5  ;;  %v1273_v29 = vld [vmem:[%s3318_s14 + $0x38] sm:$0xf] }
  0x45   : > { %2757 = vmatpush3.bf16.msra.mxu0 %v3002_v36  ;;  %v647_v36 = vld [vmem:[%s3265_s29 + $0x34] sm:$0x1]  ;;  %v730_v47 = vor.u32 %v729_v39, %v726_v38  ;;  %v740_v48 = vrot.slane %v738_v41, 4  ;;  %v743_v53 = vrot.slane %v741_v45, 5  ;;  %v1263_v38 = vld [vmem:[%s3318_s14 + $0x10] sm:$0xf] }
  0x46   : > { %2781 = vmatpush3.bf16.msra.mxu1 %v3003_v44  ;;  %2758 = vmatprep.subr.bf16.mxu0 %v3008_v58  ;;  %v649_v44 = vld [vmem:[%s3265_s29 + $0x3c] sm:$0x1]  ;;  %v747_v46 = vshll.u32 %v647_v36, 16  ;;  %v1295_v36 = vrot.slane %v1293_v28, 5  ;;  %v1265_v41 = vld [vmem:[%s3318_s14 + $0x18] sm:$0xf] }
  0x47   : > { %2782 = vmatprep.subr.bf16.mxu1 %v3009_v4  ;;  %v761_v54 = vshll.u32 %v649_v44, 16  ;;  %v731_v56 = vrot.slane %v730_v47, 4  ;;  %v744_v63 = vor.u32 %v743_v53, %v740_v48  ;;  %v1304_v45 = vshrl.u32 %v1263_v38, 16 }
  0x48   : > { %v749_v1 = vrot.slane %v747_v46, 5  ;;  %v1296_v44 = vor.u32 %v1295_v36, %v1292_v35  ;;  %v1307_v46 = vshll.u32 %v1263_v38, 16  ;;  %v1313_v47 = vshll.u32 %v1264_v40, 16  ;;  %v3040_v35 = vld [vmem:[%s3411_s10 + $0x20] ss:$8 sps:$4 sm:$0xff]   ;;  %v3038_v40 = vld [vmem:[%s3663_s4 + $0x1b0] sm:$0xff]  }
  0x49   : > { %2759 = vmatpush3.bf16.msra.mxu0 %v3008_v58  ;;  %v757_v58 = vrot.slane %v755_v50, 5  ;;  %v736_v0 = vsel %vm3340_vm2, %v731_v56, %v735_v43  ;;  %v763_v3 = vrot.slane %v761_v54, 5  ;;  %v745_v5 = vrot.slane %v744_v63, 4  ;;  %v3029_v43 = vld [vmem:[%s3663_s4 + $0x150] sm:$0xff]  }
  0x4a   : > { %2783 = vmatpush3.bf16.msra.mxu1 %v3009_v4  ;;  %2760 = vmatprep.subr.bf16.mxu0 %v3010_v9  ;;  %v3018_v4 = vld [vmem:[%s3663_s4 + $0x130] sm:$0xff]   ;;  %v2375_v8 = vcombine.low %v722_v62, %v736_v0  ;;  %v1318_v49 = vshrl.u32 %v1265_v41, 16  ;;  %v1321_v50 = vshll.u32 %v1265_v41, 16  ;;  %v1297_v52 = vrot.slane %v1296_v44, 4 }
  0x4b   : > { %2784 = vmatprep.subr.bf16.mxu1 %v3011_v17  ;;  %v758_v2 = vor.u32 %v757_v58, %v754_v57  ;;  %v750_v11 = vsel %vm3340_vm2, %v745_v5, %v749_v1  ;;  %v1306_v53 = vrot.slane %v1304_v45, 4  ;;  %v1309_v54 = vrot.slane %v1307_v46, 5  ;;  %v3039_v45 = vld [vmem:[%s3663_s4 + $0x1f0] sm:$0xff]  }
  0x4c   : > { %v1320_v57 = vrot.slane %v1318_v49, 4  ;;  %v1323_v58 = vrot.slane %v1321_v50, 5  ;;  %v1315_v0 = vrot.slane %v1313_v47, 5  ;;  %v1374_v38 = vshrl.u32 %v1273_v29, 16 }
  0x4d   : > { %2761 = vmatpush3.bf16.msra.mxu0 %v3010_v9  ;;  %v759_v9 = vrot.slane %v758_v2, 4  ;;  %v1310_v62 = vor.u32 %v1309_v54, %v1306_v53 }
  0x4e   : > { %2785 = vmatpush3.bf16.msra.mxu1 %v3011_v17  ;;  %2762 = vmatprep.subr.bf16.mxu0 %v3012_v25  ;;  %v3025_v17 = vld [vmem:[%s3663_s4 + $0x160] sm:$0xff]   ;;  %v1324_v1 = vor.u32 %v1323_v58, %v1320_v57  ;;  %v1376_v47 = vrot.slane %v1374_v38, 4  ;;  %v3043_v58 = vld [vmem:[%s3663_s4 + $0x1e8] sm:$0xff]   ;;  %v3059_v38 = vld [vmem:[%s3663_s4 + $0x230] sm:$0xff]  }
  0x4f   : > { %2786 = vmatprep.subr.bf16.mxu1 %v3013_v31  ;;  %v764_v12 = vsel %vm3340_vm2, %v759_v9, %v763_v3  ;;  %v1311_v3 = vrot.slane %v1310_v62, 4  ;;  %v3036_v9 = vld [vmem:[%s3663_s4 + $0x1b8] sm:$0xff]  }
  0x50   : > { %v2376_v14 = vcombine.low %v750_v11, %v764_v12  ;;  %v1325_v5 = vrot.slane %v1324_v1, 4  ;;  %v1268_v11 = vld [vmem:[%s3318_s14 + $0x24] sm:$0x1]  ;;  %v1269_v12 = vld [vmem:[%s3318_s14 + $0x28] sm:$0xf] }
  0x51   : > { %2763 = vmatpush3.bf16.msra.mxu0 %v3012_v25  ;;  %v1279_v25 = vshll.u32 %v1259_v20, 16  ;;  %v1349_v21 = vshll.u32 %v1269_v12, 16  ;;  %v3041_v62 = vld [vmem:[%s3411_s10 + $0x30] ss:$8 sps:$4 sm:$0xff]  }
  0x52   : > { %2787 = vmatpush3.bf16.msra.mxu1 %v3013_v31  ;;  %2796 = vmatprep.subr.bf16.mxu0 %v3016_v51  ;;  %v1278_v31 = vrot.slane %v1276_v24, 4  ;;  %v1272_v24 = vld [vmem:[%s3318_s14 + $0x34] sm:$0x1] }
  0x53   : > { %2820 = vmatprep.subr.bf16.mxu1 %v3017_v55  ;;  %v1281_v32 = vrot.slane %v1279_v25, 5 }
  0x54   : > { %2765 = vmatmul.mubr.bf16.vlgmr.msra.gmra.mxu0 %v2374_v60  ;;  %v3031_v60 = vld [vmem:[%s3663_s4 + $0x148] sm:$0xff]  }
  0x55   : > { %2789 = vmatmul.mubr.bf16.vlgmr.msra.gmra.mxu1 %v3015_v61  ;;  %2797 = vmatpush3.bf16.msra.mxu0 %v3016_v51  ;;  %v1282_v39 = vor.u32 %v1281_v32, %v1278_v31  ;;  %v1327_v51 = vshll.u32 %v1266_v42, 16  ;;  %v1302_v61 = vsel %vm3340_vm2, %v1297_v52, %v1301_v37  ;;  %v1274_v32 = vld [vmem:[%s3318_s14 + $0x3c] sm:$0x1]  ;;  %v1369_v37 = vshll.u32 %v1272_v24, 16  ;;  %v2549_v24 = vld [vmem:[%s3265_s29 + $0x28] sm:$0xf] }
  0x56   : > { %2821 = vmatpush3.bf16.msra.mxu1 %v3017_v55  ;;  %2798 = vmatprep.subr.bf16.mxu0 %v3018_v4  ;;  %v3030_v55 = vld [vmem:[%s3663_s4 + $0x108] sm:$0xff]   ;;  %v1383_v44 = vshll.u32 %v1274_v32, 16  ;;  %v2552_v32 = vld [vmem:[%s3265_s29 + $0x34] sm:$0x1] }
  0x57   : > { %2822 = vmatprep.subr.bf16.mxu1 %v3019_v7  ;;  %2768 = vmatprep.mubr.bf16.mxu0 %v2375_v8  ;;  %v1283_v48 = vrot.slane %v1282_v39, 4  ;;  %v1329_v2 = vrot.slane %v1327_v51, 5  ;;  %v1377_v39 = vshll.u32 %v1273_v29, 16  ;;  %v1371_v51 = vrot.slane %v1369_v37, 5 }
  0x58   : > { %2792 = vmatprep.mubr.bf16.mxu1 %v3022_v6  ;;  %v3033_v6 = vld [vmem:[%s3663_s4 + $0x140] sm:$0xff]   ;;  %v1385_v54 = vrot.slane %v1383_v44, 5  ;;  %v1959_v37 = vshll.u32 %v2549_v24, 16 }
  0x59   : > { %2799 = vmatpush3.bf16.msra.mxu0 %v3018_v4  ;;  %v1288_v56 = vsel %vm3340_vm2, %v1283_v48, %v1287_v34  ;;  %v3032_v4 = vld [vmem:[%s3663_s4 + $0x100] sm:$0xff]   ;;  %v1330_v8 = vsel %vm3340_vm2, %v1325_v5, %v1329_v2  ;;  %v1363_v34 = vshll.u32 %v1271_v23, 16  ;;  %v1379_v48 = vrot.slane %v1377_v39, 5  ;;  %v3054_v5 = vld [vmem:[%s3265_s29 + $0x8] ss:$8 sps:$4 sm:$0xff]  }
  0x5a   : > { %2823 = vmatpush3.bf16.msra.mxu1 %v3019_v7  ;;  %2800 = vmatprep.subr.bf16.mxu0 %v3020_v10  ;;  %v2457_v63 = vcombine.low %v1288_v56, %v1302_v61  ;;  %v1316_v7 = vsel %vm3340_vm2, %v1311_v3, %v1315_v0  ;;  %v3044_v2 = vld [vmem:[%s3663_s4 + $0x1a0] sm:$0xff]  }
  0x5b   : > { %2824 = vmatprep.subr.bf16.mxu1 %v3021_v13  ;;  %v2458_v20 = vcombine.low %v1316_v7, %v1330_v8  ;;  %v1380_v53 = vor.u32 %v1379_v48, %v1376_v47  ;;  %v3045_v3 = vld [vmem:[%s3663_s4 + $0x1e0] sm:$0xff]   ;;  %v3047_v7 = vld [vmem:[%s3663_s4 + $0x1d8] sm:$0xff]   ;;  %v3048_v8 = vld [vmem:[%s3663_s4 + $0x190] sm:$0xff]   ;;  %v1979_v47 = vshll.u32 %v2552_v32, 16 }
  0x5c   : > { %2769 = vmatmul.mubr.bf16.gmra.mxu0 %v2376_v14  ;;  %v1270_v14 = vld [vmem:[%s3318_s14 + $0x2c] sm:$0x1]  ;;  %v3063_v48 = vld [vmem:[%s3256_s18 + $0x28] ss:$8 sps:$4 sm:$0xff]   ;;  %v2556_v32 = vld [vmem:[%s3265_s29 + $0x44] sm:$0x1] }
  0x5d   : > { %2801 = vmatpush3.bf16.msra.mxu0 %v3020_v10  ;;  %2793 = vmatmul.mubr.bf16.gmra.mxu1 %v3023_v15  ;;  %v1267_v10 = vld [vmem:[%s3318_s14 + $0x20] sm:$0xf]  ;;  %v1355_v22 = vshll.u32 %v1270_v14, 16  ;;  %v1381_v61 = vrot.slane %v1380_v53, 4  ;;  %v3058_v14 = vld [vmem:[%s3663_s4 + $0x238] sm:$0xff]  }
  0x5e   : > { %2825 = vmatpush3.bf16.msra.mxu1 %v3021_v13  ;;  %2802 = vmatprep.subr.bf16.mxu0 %v3024_v16  ;;  %v3037_v13 = vld [vmem:[%s3663_s4 + $0x1f8] sm:$0xff]   ;;  %v1332_v15 = vshrl.u32 %v1267_v10, 16 }
  0x5f   : > { %2826 = vmatprep.subr.bf16.mxu1 %v3025_v17  ;;  %2812 = vmatprep.mubr.bf16.mxu0 %v3034_v19  ;;  %v3035_v19 = vld [vmem:[%s3411_s10 + $0x10] ss:$8 sps:$4 sm:$0xff]   ;;  %v1357_v31 = vrot.slane %v1355_v22, 5  ;;  %v1386_v0 = vsel %vm3340_vm2, %v1381_v61, %v1385_v54  ;;  %s3070_s10 = scalar_lea.vmem %s3615_s9, 1024 }
  0x60   : > { %2836 = vmatprep.mubr.bf16.mxu1 %v2457_v63  ;;  %v1334_v25 = vrot.slane %v1332_v15, 4  ;;  %v2541_v15 = vld [vmem:[%s3265_s29 + $0x8] sm:$0xf]  ;;  %v3061_v61 = vld [vmem:[%s3265_s29 + $0x38] ss:$8 sps:$4 sm:$0xff]   ;;  %p3071_p11 = scmp.ne.s32.totalorder %s3615_s9, %s3070_s10 }
  0x61   : > { %2803 = vmatpush3.bf16.msra.mxu0 %v3024_v16  ;;  %v1335_v16 = vshll.u32 %v1267_v10, 16  ;;  %v3050_v10 = vld [vmem:[%s3663_s4 + $0x188] sm:$0xff]  }
  0x62   : > { %2827 = vmatpush3.bf16.msra.mxu1 %v3025_v17  ;;  %2804 = vmatprep.subr.bf16.mxu0 %v3026_v18  ;;  %v1341_v17 = vshll.u32 %v1268_v11, 16  ;;  %v3051_v11 = vld [vmem:[%s3663_s4 + $0x1c8] sm:$0xff]   ;;  %p3072_p12 = pnand %p3071_p11, %p3208_p5 }
  0x63   : > { %2828 = vmatprep.subr.bf16.mxu1 %v3027_v30  ;;  %v1337_v26 = vrot.slane %v1335_v16, 5  ;;  %v2542_v16 = vld [vmem:[%s3265_s29 + $0xc] sm:$0x1] }
  0x64   : > { %v1343_v27 = vrot.slane %v1341_v17, 5  ;;  %v2543_v17 = vld [vmem:[%s3265_s29 + $0x10] sm:$0xf]  ;;  %v1909_v22 = vshll.u32 %v2542_v16, 16  ;;  %p3073_p13 = pneg %p3072_p12 }
  0x65   : > { %2805 = vmatpush3.bf16.msra.mxu0 %v3026_v18  ;;  %v1346_v18 = vshrl.u32 %v1269_v12, 16  ;;  %v1338_v36 = vor.u32 %v1337_v26, %v1334_v25  ;;  %v3052_v12 = vld [vmem:[%s3663_s4 + $0x180] sm:$0xff]   ;;  %v1917_v25 = vshll.u32 %v2543_v17, 16  ;;  %v2550_v26 = vld [vmem:[%s3265_s29 + $0x2c] sm:$0x1] }
  0x66   : > { %2829 = vmatpush3.bf16.msra.mxu1 %v3027_v30  ;;  %2806 = vmatprep.subr.bf16.mxu0 %v3028_v33  ;;  %v1351_v30 = vrot.slane %v1349_v21, 5  ;;  %v1903_v21 = vshll.u32 %v2541_v15, 16 }
  0x67   : > { %2830 = vmatprep.subr.bf16.mxu1 %v3029_v43  ;;  %v1348_v28 = vrot.slane %v1346_v18, 4  ;;  %v1339_v46 = vrot.slane %v1338_v36, 4  ;;  %v2544_v18 = vld [vmem:[%s3265_s29 + $0x14] sm:$0x1]  ;;  %v1956_v36 = vshrl.u32 %v2549_v24, 16 }
  0x68   : > { %v1905_v29 = vrot.slane %v1903_v21, 5  ;;  %v2546_v21 = vld [vmem:[%s3265_s29 + $0x1c] sm:$0x1] }
  0x69   : > { %2807 = vmatpush3.bf16.msra.mxu0 %v3028_v33  ;;  %v1360_v33 = vshrl.u32 %v1271_v23, 16  ;;  %v1352_v41 = vor.u32 %v1351_v30, %v1348_v28  ;;  %v1344_v52 = vsel %vm3340_vm2, %v1339_v46, %v1343_v27  ;;  %v1914_v23 = vshrl.u32 %v2543_v17, 16  ;;  %v2551_v27 = vld [vmem:[%s3265_s29 + $0x30] sm:$0xf] }
  0x6a   : > { %2831 = vmatpush3.bf16.msra.mxu1 %v3029_v43  ;;  %2808 = vmatprep.subr.bf16.mxu0 %v3030_v55  ;;  %v1365_v43 = vrot.slane %v1363_v34, 5  ;;  %v1911_v34 = vrot.slane %v1909_v22, 5  ;;  %v1961_v46 = vrot.slane %v1959_v37, 5  ;;  %v3068_v37 = vld [vmem:[%s3663_s4 + $0x208] sm:$0xff]  }
  0x6b   : > { %2832 = vmatprep.subr.bf16.mxu1 %v3031_v60  ;;  %v1362_v42 = vrot.slane %v1360_v33, 4  ;;  %v1353_v49 = vrot.slane %v1352_v41, 4  ;;  %v1916_v30 = vrot.slane %v1914_v23, 4  ;;  %v3057_v33 = vld [vmem:[%s3256_s18 + $0x18] ss:$8 sps:$4 sm:$0xff]   ;;  %v1970_v41 = vshrl.u32 %v2551_v27, 16 }
  0x6d   : > { %2809 = vmatpush3.bf16.msra.mxu0 %v3030_v55  ;;  %v1366_v50 = vor.u32 %v1365_v43, %v1362_v42  ;;  %v3042_v55 = vld [vmem:[%s3663_s4 + $0x1a8] sm:$0xff]   ;;  %v1358_v56 = vsel %vm3340_vm2, %v1353_v49, %v1357_v31  ;;  %v1923_v31 = vshll.u32 %v2544_v18, 16  ;;  %v1973_v42 = vshll.u32 %v2551_v27, 16 }
  0x6e   : > { %2833 = vmatpush3.bf16.msra.mxu1 %v3031_v60  ;;  %2810 = vmatprep.subr.bf16.mxu0 %v3032_v4  ;;  %v2459_v60 = vcombine.low %v1344_v52, %v1358_v56  ;;  %v3060_v43 = vld [vmem:[%s3265_s29 + $0x28] ss:$8 sps:$4 sm:$0xff]  }
  0x6f   : > { %2834 = vmatprep.subr.bf16.mxu1 %v3033_v6  ;;  %v1367_v57 = vrot.slane %v1366_v50, 4  ;;  %v1925_v50 = vrot.slane %v1923_v31, 5  ;;  %v1975_v52 = vrot.slane %v1973_v42, 5  ;;  %v3062_v56 = vld [vmem:[%s3663_s4 + $0x228] sm:$0xff]   ;;  %v2554_v31 = vld [vmem:[%s3265_s29 + $0x3c] sm:$0x1] }
  0x71   : > { %2811 = vmatpush3.bf16.msra.mxu0 %v3032_v4  ;;  %v1372_v63 = vsel %vm3340_vm2, %v1367_v57, %v1371_v51  ;;  %v3046_v4 = vld [vmem:[%s3663_s4 + $0x198] sm:$0xff]   ;;  %v1972_v51 = vrot.slane %v1970_v41, 4  ;;  %v2007_v41 = vshll.u32 %v2556_v32, 16 }
  0x72   : > { %2835 = vmatpush3.bf16.msra.mxu1 %v3033_v6  ;;  %2844 = vmatprep.subr.bf16.mxu0 %v3036_v9  ;;  %v2460_v1 = vcombine.low %v1372_v63, %v1386_v0  ;;  %v3055_v6 = vld [vmem:[%s3256_s18 + $0x8] ss:$8 sps:$4 sm:$0xff]  }
  0x73   : > { %2868 = vmatprep.subr.bf16.mxu1 %v3037_v13  ;;  %v1976_v57 = vor.u32 %v1975_v52, %v1972_v51 }
  0x74   : > { %2813 = vmatmul.mubr.bf16.vlgmr.msra.gmra.mxu0 %v3035_v19  ;;  %v3056_v19 = vld [vmem:[%s3265_s29 + $0x18] ss:$8 sps:$4 sm:$0xff]  }
  0x75   : > { %2837 = vmatmul.mubr.bf16.vlgmr.msra.gmra.mxu1 %v2458_v20  ;;  %2845 = vmatpush3.bf16.msra.mxu0 %v3036_v9  ;;  %v3049_v9 = vld [vmem:[%s3663_s4 + $0x1d0] sm:$0xff]   ;;  %v1900_v20 = vshrl.u32 %v2541_v15, 16  ;;  %v1977_v0 = vrot.slane %v1976_v57, 4  ;;  %v3066_v15 = vld [vmem:[%s3663_s4 + $0x218] sm:$0xff]  }
  0x76   : > { %2869 = vmatpush3.bf16.msra.mxu1 %v3037_v13  ;;  %2846 = vmatprep.subr.bf16.mxu0 %v3038_v40  ;;  %v3053_v13 = vld [vmem:[%s3663_s4 + $0x1c0] sm:$0xff]  }
  0x77   : > { %2870 = vmatprep.subr.bf16.mxu1 %v3039_v45  ;;  %2816 = vmatprep.mubr.bf16.mxu0 %v3040_v35  ;;  %v1902_v28 = vrot.slane %v1900_v20, 4  ;;  %v1919_v35 = vrot.slane %v1917_v25, 5  ;;  %v3067_v20 = vld [vmem:[%s3663_s4 + $0x210] sm:$0xff]  }
  0x78   : > { %2840 = vmatprep.mubr.bf16.mxu1 %v2459_v60 }
  0x79   : > { %2847 = vmatpush3.bf16.msra.mxu0 %v3038_v40  ;;  %v1906_v39 = vor.u32 %v1905_v29, %v1902_v28  ;;  %v1965_v40 = vshll.u32 %v2550_v26, 16  ;;  %v1920_v44 = vor.u32 %v1919_v35, %v1916_v30  ;;  %v2548_v26 = vld [vmem:[%s3265_s29 + $0x24] sm:$0x1] }
  0x7a   : > { %2871 = vmatpush3.bf16.msra.mxu1 %v3039_v45  ;;  %2848 = vmatprep.subr.bf16.mxu0 %v3042_v55  ;;  %v1958_v45 = vrot.slane %v1956_v36, 4  ;;  %v1951_v36 = vshll.u32 %v2548_v26, 16 }
  0x7b   : > { %2872 = vmatprep.subr.bf16.mxu1 %v3043_v58  ;;  %v1907_v49 = vrot.slane %v1906_v39, 4  ;;  %v1921_v53 = vrot.slane %v1920_v44, 4  ;;  %v1993_v39 = vshll.u32 %v2554_v31, 16 }
  0x7c   : > { %2817 = vmatmul.mubr.bf16.gmra.mxu0 %v3041_v62  ;;  %v1962_v54 = vor.u32 %v1961_v46, %v1958_v45  ;;  %v1953_v45 = vrot.slane %v1951_v36, 5  ;;  %v3069_v46 = vld [vmem:[%s3663_s4 + $0x200] sm:$0xff]  }
  0x7d   : > { %2849 = vmatpush3.bf16.msra.mxu0 %v3042_v55  ;;  %2841 = vmatmul.mubr.bf16.gmra.mxu1 %v2460_v1  ;;  %v1967_v55 = vrot.slane %v1965_v40, 5  ;;  %v1912_v62 = vsel %vm3340_vm2, %v1907_v49, %v1911_v34  ;;  %v1926_v63 = vsel %vm3340_vm2, %v1921_v53, %v1925_v50  ;;  %v3064_v1 = vld [vmem:[%s3256_s18 + $0x38] ss:$8 sps:$4 sm:$0xff]   ;;  %v1937_v34 = vshll.u32 %v2546_v21, 16 }
  0x7e   : > { %2873 = vmatpush3.bf16.msra.mxu1 %v3043_v58  ;;  %2850 = vmatprep.subr.bf16.mxu0 %v3044_v2  ;;  %v1981_v58 = vrot.slane %v1979_v47, 5  ;;  %v1963_v60 = vrot.slane %v1962_v54, 4  ;;  %v2009_v50 = vrot.slane %v2007_v41, 5 }
  0x7f   : > { %2874 = vmatprep.subr.bf16.mxu1 %v3045_v3  ;;  %2860 = vmatprep.mubr.bf16.mxu0 %v3054_v5  ;;  %v2545_v5 = vld [vmem:[%s3265_s29 + $0x18] sm:$0xf] }
  0x80   : > { %2884 = vmatprep.mubr.bf16.mxu1 %v3055_v6  ;;  %v2547_v6 = vld [vmem:[%s3265_s29 + $0x20] sm:$0xf] }
  0x81   : > { %2851 = vmatpush3.bf16.msra.mxu0 %v3044_v2  ;;  %v1968_v2 = vsel %vm3340_vm2, %v1963_v60, %v1967_v55 }
  0x82   : > { %2875 = vmatpush3.bf16.msra.mxu1 %v3045_v3  ;;  %2852 = vmatprep.subr.bf16.mxu0 %v3046_v4  ;;  %v3065_v3 = vld [vmem:[%s3663_s4 + $0x220] sm:$0xff]  }
  0x83   : > { %2876 = vmatprep.subr.bf16.mxu1 %v3047_v7 }
  0x85   : > { %2853 = vmatpush3.bf16.msra.mxu0 %v3046_v4  ;;  %v1982_v4 = vsel %vm3340_vm2, %v1977_v0, %v1981_v58 }
  0x86   : > { %2877 = vmatpush3.bf16.msra.mxu1 %v3047_v7  ;;  %2854 = vmatprep.subr.bf16.mxu0 %v3048_v8  ;;  %v2573_v7 = vcombine.low %v1912_v62, %v1926_v63 }
  0x87   : > { %2878 = vmatprep.subr.bf16.mxu1 %v3049_v9 }
  0x89   : > { %2855 = vmatpush3.bf16.msra.mxu0 %v3048_v8  ;;  %v2553_v8 = vld [vmem:[%s3265_s29 + $0x38] sm:$0xf] }
  0x8a   : > { %2879 = vmatpush3.bf16.msra.mxu1 %v3049_v9  ;;  %2856 = vmatprep.subr.bf16.mxu0 %v3050_v10  ;;  %v2555_v9 = vld [vmem:[%s3265_s29 + $0x40] sm:$0xf]  ;;  %v1984_v16 = vshrl.u32 %v2553_v8, 16  ;;  %v1987_v17 = vshll.u32 %v2553_v8, 16  ;;  %s3076_s29 = scalar_lea.vmem %s3075_s16, 2048 }
  0x8b   : > { %2880 = vmatprep.subr.bf16.mxu1 %v3051_v11  ;;  %v1998_v18 = vshrl.u32 %v2555_v9, 16  ;;  %p3078_p1 = scmp.lt.s32.totalorder %s3076_s29, %s3070_s10 }
  0x8c   : > { %v1986_v27 = vrot.slane %v1984_v16, 4  ;;  %v1989_v28 = vrot.slane %v1987_v17, 5 }
  0x8d   : > { %2857 = vmatpush3.bf16.msra.mxu0 %v3050_v10  ;;  %v2575_v10 = vcombine.low %v1968_v2, %v1982_v4  ;;  %v2000_v29 = vrot.slane %v1998_v18, 4  ;;  %p3079_p2 = por %p3078_p1, %p3077_p0 }
  0x8e   : > { %2881 = vmatpush3.bf16.msra.mxu1 %v3051_v11  ;;  %2858 = vmatprep.subr.bf16.mxu0 %v3052_v12  ;;  %v1928_v11 = vshrl.u32 %v2545_v5, 16 }
  0x8f   : > { %2882 = vmatprep.subr.bf16.mxu1 %v3053_v13  ;;  %p3080_p3 = pnand %p3079_p2, %p3073_p13 }
  0x90   : > { %v1930_v22 = vrot.slane %v1928_v11, 4 }
  0x91   : > { %2859 = vmatpush3.bf16.msra.mxu0 %v3052_v12  ;;  %v1931_v12 = vshll.u32 %v2545_v5, 16 }
  0x92   : > { %2883 = vmatpush3.bf16.msra.mxu1 %v3053_v13  ;;  %2892 = vmatprep.subr.bf16.mxu0 %v3058_v14  ;;  %v1942_v13 = vshrl.u32 %v2547_v6, 16 }
  0x93   : > { %2916 = vmatprep.subr.bf16.mxu1 %v3058_v14  ;;  %v1933_v23 = vrot.slane %v1931_v12, 5 }
  0x94   : > { %2861 = vmatmul.mubr.bf16.vlgmr.msra.gmra.mxu0 %v3056_v19  ;;  %v2001_v19 = vshll.u32 %v2555_v9, 16  ;;  %v1944_v24 = vrot.slane %v1942_v13, 4 }
  0x95   : > { %2885 = vmatmul.mubr.bf16.vlgmr.msra.gmra.mxu1 %v3057_v33  ;;  %2893 = vmatpush3.bf16.msra.mxu0 %v3058_v14  ;;  %v1934_v33 = vor.u32 %v1933_v23, %v1930_v22 }
  0x96   : > { %2924 = vmatpush3.bf16.msra.mxu1 %v3058_v14  ;;  %2894 = vmatprep.subr.bf16.mxu0 %v3059_v38  ;;  %v1945_v14 = vshll.u32 %v2547_v6, 16  ;;  %v2003_v30 = vrot.slane %v2001_v19, 5 }
  0x97   : > { %2917 = vmatprep.subr.bf16.mxu1 %v3059_v38  ;;  %2864 = vmatprep.mubr.bf16.mxu0 %v3060_v43  ;;  %v1935_v42 = vrot.slane %v1934_v33, 4  ;;  %v1939_v43 = vrot.slane %v1937_v34, 5 }
  0x98   : > { %2888 = vmatprep.mubr.bf16.mxu1 %v3063_v48  ;;  %v1947_v25 = vrot.slane %v1945_v14, 5  ;;  %v2004_v40 = vor.u32 %v2003_v30, %v2000_v29  ;;  %v1995_v48 = vrot.slane %v1993_v39, 5 }
  0x99   : > { %2895 = vmatpush3.bf16.msra.mxu0 %v3059_v38  ;;  %v1940_v51 = vsel %vm3340_vm2, %v1935_v42, %v1939_v43 }
  0x9a   : > { %2925 = vmatpush3.bf16.msra.mxu1 %v3059_v38  ;;  %2896 = vmatprep.subr.bf16.mxu0 %v3062_v56  ;;  %v1948_v35 = vor.u32 %v1947_v25, %v1944_v24  ;;  %v1990_v38 = vor.u32 %v1989_v28, %v1986_v27  ;;  %v2005_v49 = vrot.slane %v2004_v40, 4 }
  0x9b   : > { %2918 = vmatprep.subr.bf16.mxu1 %v3062_v56 }
  0x9c   : > { %2865 = vmatmul.mubr.bf16.gmra.mxu0 %v3061_v61  ;;  %v1949_v44 = vrot.slane %v1948_v35, 4  ;;  %v1991_v47 = vrot.slane %v1990_v38, 4  ;;  %v2010_v54 = vsel %vm3340_vm2, %v2005_v49, %v2009_v50 }
  0x9d   : > { %2897 = vmatpush3.bf16.msra.mxu0 %v3062_v56  ;;  %2889 = vmatmul.mubr.bf16.gmra.mxu1 %v3064_v1 }
  0x9e   : > { %2926 = vmatpush3.bf16.msra.mxu1 %v3062_v56  ;;  %2898 = vmatprep.subr.bf16.mxu0 %v3065_v3  ;;  %v1954_v52 = vsel %vm3340_vm2, %v1949_v44, %v1953_v45  ;;  %v1996_v53 = vsel %vm3340_vm2, %v1991_v47, %v1995_v48 }
  0x9f   : > { %2919 = vmatprep.subr.bf16.mxu1 %v3065_v3  ;;  %2908 = vmatprep.mubr.bf16.mxu0 %v2573_v7  ;;  %v2574_v55 = vcombine.low %v1940_v51, %v1954_v52  ;;  %v2576_v56 = vcombine.low %v1996_v53, %v2010_v54 }
  0xa0   : > { %2912 = vmatprep.mubr.bf16.mxu1 %v2575_v10 }
  0xa1   : > { %2899 = vmatpush3.bf16.msra.mxu0 %v3065_v3 }
  0xa2   : > { %2927 = vmatpush3.bf16.msra.mxu1 %v3065_v3  ;;  %2900 = vmatprep.subr.bf16.mxu0 %v3066_v15 }
  0xa3   : > { %2920 = vmatprep.subr.bf16.mxu1 %v3066_v15 }
  0xa5   : > { %2901 = vmatpush3.bf16.msra.mxu0 %v3066_v15 }
  0xa6   : > { %2928 = vmatpush3.bf16.msra.mxu1 %v3066_v15  ;;  %2902 = vmatprep.subr.bf16.mxu0 %v3067_v20 }
  0xa7   : > { %2921 = vmatprep.subr.bf16.mxu1 %v3067_v20 }
  0xa9   : > { %2903 = vmatpush3.bf16.msra.mxu0 %v3067_v20 }
  0xaa   : > { %2929 = vmatpush3.bf16.msra.mxu1 %v3067_v20  ;;  %2904 = vmatprep.subr.bf16.mxu0 %v3068_v37 }
  0xab   : > { %2922 = vmatprep.subr.bf16.mxu1 %v3068_v37 }
  0xad   : > { %2905 = vmatpush3.bf16.msra.mxu0 %v3068_v37 }
  0xae   : > { %2930 = vmatpush3.bf16.msra.mxu1 %v3068_v37  ;;  %2906 = vmatprep.subr.bf16.mxu0 %v3069_v46 }
  0xaf   : > { %2923 = vmatprep.subr.bf16.mxu1 %v3069_v46 }
  0xb1   : > { %2907 = vmatpush3.bf16.msra.mxu0 %v3069_v46 }
  0xb2   : > { %2931 = vmatpush3.bf16.msra.mxu1 %v3069_v46 }
  0xb4   : > { %2909 = vmatmul.mubr.bf16.vlgmr.msra.gmra.mxu0 %v2574_v55 }
  0xb5   : > { %2913 = vmatmul.mubr.bf16.vlgmr.msra.gmra.mxu1 %v2576_v56 }
  0xf4   : > { %v2718_v57 = vpop.f32.mrf.mxu0 }
  0xf5   : > { %v2742_v60 = vpop.f32.mrf.mxu1 }
  0xf6   : > { %v466_v58 = vpop.f32.mrf.mxu0  ;;  %v612_v46 = vadd.f32 %v2742_v60, %v2718_v57 }
  0xf7   : > { %v603_v62 = vpop.f32.mrf.mxu1 }
  0xf8   : > { %v2719_v61 = vpop.f32.mrf.mxu0  ;;  %v604_v50 = vadd.f32 %v603_v62, %v466_v58 }
  0xf9   : > { %v2743_v1 = vpop.f32.mrf.mxu1 }
  0xfa   : > { %v469_v63 = vpop.f32.mrf.mxu0  ;;  %v615_v54 = vadd.f32 %v2743_v1, %v2719_v61 }
  0xfb   : > { %v606_v3 = vpop.f32.mrf.mxu1 }
  0xfc   : > { %v2722_v0 = vpop.f32.mrf.mxu0  ;;  %v607_v60 = vadd.f32 %v606_v3, %v469_v63 }
  0xfd   : > { %v2746_v4 = vpop.f32.mrf.mxu1 }
  0xfe   : > { %v482_v2 = vpop.f32.mrf.mxu0  ;;  %v628_v48 = vadd.f32 %v2746_v4, %v2722_v0 }
  0xff   : > { %v619_v5 = vpop.f32.mrf.mxu1 }
 0x100   : > { %v2723_v59 = vpop.f32.mrf.mxu0  ;;  %v620_v52 = vadd.f32 %v619_v5, %v482_v2 }
 0x101   : > { %v2747_v8 = vpop.f32.mrf.mxu1 }
 0x102   : > { %v485_v6 = vpop.f32.mrf.mxu0 }
 0x103   : > { %v622_v10 = vpop.f32.mrf.mxu1 }
 0x104   : > { %v623_v58 = vadd.f32 %v622_v10, %v485_v6 }
 0x114   : > { %v2766_v7 = vpop.f32.mrf.mxu0 }
 0x115   : > { %v2790_v11 = vpop.f32.mrf.mxu1  ;;  %v913_v51 = vadd.f32 %v2766_v7, %v612_v46 }
 0x116   : > { %v880_v9 = vpop.f32.mrf.mxu0 }
 0x117   : > { %v1050_v13 = vpop.f32.mrf.mxu1  ;;  %v911_v55 = vadd.f32 %v880_v9, %v604_v50 }
 0x118   : > { %v2767_v12 = vpop.f32.mrf.mxu0 }
 0x119   : > { %v2791_v15 = vpop.f32.mrf.mxu1  ;;  %v914_v0 = vadd.f32 %v2767_v12, %v615_v54  ;;  %v1081_v46 = vadd.f32 %v1050_v13, %v911_v55 }
 0x11a   : > { %v883_v14 = vpop.f32.mrf.mxu0 }
 0x11b   : > { %v1053_v17 = vpop.f32.mrf.mxu1  ;;  %v912_v2 = vadd.f32 %v883_v14, %v607_v60  ;;  %v1084_v9 = vadd.f32 %v2791_v15, %v914_v0 }
 0x11c   : > { %v2770_v16 = vpop.f32.mrf.mxu0 }
 0x11d   : > { %v2794_v19 = vpop.f32.mrf.mxu1  ;;  %v917_v53 = vadd.f32 %v2770_v16, %v628_v48 }
 0x11e   : > { %v896_v18 = vpop.f32.mrf.mxu0 }
 0x11f   : > { %v1066_v21 = vpop.f32.mrf.mxu1  ;;  %v1087_v62 = vadd.f32 %v2794_v19, %v917_v53 }
 0x120   : > { %v2771_v20 = vpop.f32.mrf.mxu0 }
 0x121   : > { %v2795_v23 = vpop.f32.mrf.mxu1 }
 0x122   : > { %v899_v22 = vpop.f32.mrf.mxu0 }
 0x123   : > { %v1069_v25 = vpop.f32.mrf.mxu1  ;;  %v916_v48 = vadd.f32 %v899_v22, %v623_v58 }
 0x134   : > { %v2814_v24 = vpop.f32.mrf.mxu0 }
 0x135   : > { %v2838_v27 = vpop.f32.mrf.mxu1 }
 0x136   : > { %v1220_v26 = vpop.f32.mrf.mxu0 }
 0x137   : > { %v1502_v29 = vpop.f32.mrf.mxu1  ;;  %v1251_v50 = vadd.f32 %v1220_v26, %v1081_v46 }
 0x138   : > { %v2815_v28 = vpop.f32.mrf.mxu0 }
 0x139   : > { %v2839_v31 = vpop.f32.mrf.mxu1  ;;  %v1254_v3 = vadd.f32 %v2815_v28, %v1084_v9  ;;  %v1533_v13 = vadd.f32 %v1502_v29, %v1251_v50 }
 0x13a   : > { %v1223_v30 = vpop.f32.mrf.mxu0 }
 0x13b   : > { %v3591_v33 = vpop.f32.mrf.mxu1  ;;  %v1536_v15 = vadd.f32 %v2839_v31, %v1254_v3 }
 0x13c   : > { %v2818_v32 = vpop.f32.mrf.mxu0  ;;  %3670 = vst [vmem:[#allocation5_spill] sm:$0xff] %v3591_v33  ;;  %v631_v33 = vadd.f32 %v2747_v8, %v2723_v59 }
 0x13d   : > { %v2842_v34 = vpop.f32.mrf.mxu1  ;;  %v1257_v1 = vadd.f32 %v2818_v32, %v1087_v62 }
 0x13e   : > { %v1236_v35 = vpop.f32.mrf.mxu0  ;;  %v918_v7 = vadd.f32 %v2771_v20, %v631_v33 }
 0x13f   : > { %v1518_v36 = vpop.f32.mrf.mxu1  ;;  %v1539_v6 = vadd.f32 %v2842_v34, %v1257_v1 }
 0x140   : > { %v2819_v37 = vpop.f32.mrf.mxu0  ;;  %v1088_v59 = vadd.f32 %v2795_v23, %v918_v7 }
 0x141   : > { %v2843_v38 = vpop.f32.mrf.mxu1 }
 0x142   : > { %v1239_v39 = vpop.f32.mrf.mxu0  ;;  %v1258_v10 = vadd.f32 %v2819_v37, %v1088_v59 }
 0x143   : > { %v1521_v41 = vpop.f32.mrf.mxu1 }
 0x144   : > { %v1540_v23 = vadd.f32 %v2843_v38, %v1258_v10 }
 0x154   : > { %v2862_v40 = vpop.f32.mrf.mxu0 }
 0x155   : > { %v2886_v42 = vpop.f32.mrf.mxu1 }
 0x156   : > { %v1673_v43 = vpop.f32.mrf.mxu0 }
 0x157   : > { %v3593_v44 = vpop.f32.mrf.mxu1  ;;  %v1704_v26 = vadd.f32 %v1673_v43, %v1533_v13 }
 0x158   : > { %3671 = vst [vmem:[#allocation6_spill] sm:$0xff] %v3593_v44  ;;  %v2863_v45 = vpop.f32.mrf.mxu0  ;;  %v915_v44 = vadd.f32 %v896_v18, %v620_v52  ;;  %v1082_v18 = vadd.f32 %v1053_v17, %v912_v2 }
 0x159   : > { %v3595_v47 = vpop.f32.mrf.mxu1  ;;  %v1707_v33 = vadd.f32 %v2863_v45, %v1536_v15 }
 0x15a   : > { %3672 = vst [vmem:[#allocation7_spill] sm:$0xff] %v3595_v47  ;;  %v1676_v49 = vpop.f32.mrf.mxu0  ;;  %v1083_v47 = vadd.f32 %v2790_v11, %v913_v51  ;;  %v1085_v16 = vadd.f32 %v1066_v21, %v915_v44  ;;  %v1086_v11 = vadd.f32 %v1069_v25, %v916_v48  ;;  %v1252_v14 = vadd.f32 %v1223_v30, %v1082_v18 }
 0x15b   : > { %v3597_v56 = vpop.f32.mrf.mxu1 }
 0x15c   : > { %3673 = vst [vmem:[#allocation8_spill] sm:$0xff] %v3597_v56  ;;  %v2866_v57 = vpop.f32.mrf.mxu0  ;;  %v1253_v5 = vadd.f32 %v2814_v24, %v1083_v47  ;;  %v1255_v8 = vadd.f32 %v1236_v35, %v1085_v16  ;;  %v1256_v22 = vadd.f32 %v1239_v39, %v1086_v11 }
 0x15d   : > { %v2890_v4 = vpop.f32.mrf.mxu1  ;;  %v1710_v24 = vadd.f32 %v2866_v57, %v1539_v6 }
 0x15e   : > { %v1689_v61 = vpop.f32.mrf.mxu0  ;;  %v1535_v63 = vadd.f32 %v2838_v27, %v1253_v5  ;;  %v1537_v21 = vadd.f32 %v1518_v36, %v1255_v8  ;;  %v3674_v27 = vld [vmem:[#allocation5_spill] sm:$0xff]  ;;  %v1538_v35 = vadd.f32 %v1521_v41, %v1256_v22 }
 0x15f   : > { %v1860_v56 = vpop.f32.mrf.mxu1  ;;  %v1534_v25 = vadd.f32 %v3674_v27, %v1252_v14  ;;  %v1881_v29 = vadd.f32 %v2890_v4, %v1710_v24  ;;  %v2585_v36 = vld [vmem:[%s3664_s5] ss:$0 sm:$0xff]  ;;  %v3675_v31 = vld [vmem:[#allocation6_spill] sm:$0xff] }
 0x160   : > { %v2867_v12 = vpop.f32.mrf.mxu0  ;;  %v1706_v19 = vadd.f32 %v2862_v40, %v1535_v63  ;;  %v1708_v32 = vadd.f32 %v1689_v61, %v1537_v21  ;;  %v1875_v39 = vadd.f32 %v3675_v31, %v1704_v26 }
 0x161   : > { %v2891_v20 = vpop.f32.mrf.mxu1  ;;  %v1711_v30 = vadd.f32 %v2867_v12, %v1540_v23  ;;  %v1705_v40 = vadd.f32 %v1676_v49, %v1534_v25  ;;  %v3676_v51 = vld [vmem:[#allocation7_spill] sm:$0xff] }
 0x162   : > { %v1692_v17 = vpop.f32.mrf.mxu0  ;;  %v1877_v28 = vadd.f32 %v2886_v42, %v1706_v19  ;;  %v1879_v44 = vadd.f32 %v1860_v56, %v1708_v32  ;;  %v1878_v41 = vadd.f32 %v3676_v51, %v1707_v33 }
 0x163   : > { %v1863_v34 = vpop.f32.mrf.mxu1  ;;  %v1709_v47 = vadd.f32 %v1692_v17, %v1538_v35  ;;  %v1882_v55 = vadd.f32 %v2891_v20, %v1711_v30  ;;  %v3677_v4 = vld [vmem:[#allocation8_spill] sm:$0xff] }
 0x164   : > { %v1876_v58 = vadd.f32 %v3677_v4, %v1705_v40 }
 0x165   : > { %v1880_v56 = vadd.f32 %v1863_v34, %v1709_v47 }
 0x174   : > { %v2910_v37 = vpop.f32.mrf.mxu0 }
 0x175   : > { %v2159_v38 = vadd.f32 %v2910_v37, %v1877_v28  ;;  %v2914_v43 = vpop.f32.mrf.mxu1 }
 0x176   : > { %v2163_v42 = vadd.f32 %v2914_v43, %v1881_v29  ;;  %v2126_v45 = vpop.f32.mrf.mxu0 }
 0x177   : > { %v2174_v52 = vadd.f32 %v2585_v36, %v2159_v38  ;;  %v2157_v53 = vadd.f32 %v2126_v45, %v1875_v39  ;;  %v2142_v54 = vpop.f32.mrf.mxu1 }
 0x178   : > { %v2178_v57 = vadd.f32 %v2585_v36, %v2163_v42  ;;  %v2161_v60 = vadd.f32 %v2142_v54, %v1879_v44  ;;  %v2911_v0 = vpop.f32.mrf.mxu0 }
 0x179   : > { %v2182_v49 = vmax.f32 %v2174_v52, 0.0  ;;  %v2172_v62 = vadd.f32 %v2585_v36, %v2157_v53  ;;  %v2160_v7 = vadd.f32 %v2911_v0, %v1878_v41  ;;  %v2915_v46 = vpop.f32.mrf.mxu1 }
 0x17a   : > { %v2186_v2 = vmax.f32 %v2178_v57, 0.0  ;;  %v2176_v5 = vadd.f32 %v2585_v36, %v2161_v60  ;;  %v2164_v16 = vadd.f32 %v2915_v46, %v1882_v55  ;;  %v2129_v48 = vpop.f32.mrf.mxu0 }
 0x17b   : > { %2190 = vst [vmem:[%s289_s26 + $0x10] sm:$0xff] %v2182_v49  ;;  %v2180_v1 = vmax.f32 %v2172_v62, 0.0  ;;  %v2175_v61 = vadd.f32 %v2585_v36, %v2160_v7  ;;  %v2158_v9 = vadd.f32 %v2129_v48, %v1876_v58  ;;  %v2145_v50 = vpop.f32.mrf.mxu1 }
 0x17c   : > { %2194 = vst [vmem:[%s289_s26 + $0x30] sm:$0xff] %v2186_v2  ;;  %v2184_v59 = vmax.f32 %v2176_v5, 0.0  ;;  %v2179_v8 = vadd.f32 %v2585_v36, %v2164_v16  ;;  %v2162_v18 = vadd.f32 %v2145_v50, %v1880_v56 }
 0x17d   : > { %2188 = vst [vmem:[%s289_s26] sm:$0xff] %v2180_v1  ;;  %v2183_v63 = vmax.f32 %v2175_v61, 0.0  ;;  %v2173_v3 = vadd.f32 %v2585_v36, %v2158_v9 }
 0x17e   : > { %2192 = vst [vmem:[%s289_s26 + $0x20] sm:$0xff] %v2184_v59  ;;  %v2187_v11 = vmax.f32 %v2179_v8, 0.0  ;;  %v2177_v6 = vadd.f32 %v2585_v36, %v2162_v18 }
 0x17f   : > { %2191 = vst [vmem:[%s289_s26 + $0x18] sm:$0xff] %v2183_v63  ;;  %v2181_v10 = vmax.f32 %v2173_v3, 0.0 }
 0x180   : > { %2195 = vst [vmem:[%s289_s26 + $0x38] sm:$0xff] %v2187_v11  ;;  %v2185_v12 = vmax.f32 %v2177_v6, 0.0 }
 0x181   : > { %2189 = vst [vmem:[%s289_s26 + $0x8] sm:$0xff] %v2181_v10 }
 0x182   : > { %2193 = vst [vmem:[%s289_s26 + $0x28] sm:$0xff] %v2185_v12 }
 0x183   : > { %3083 = shalt.err (!%p3080_p3)
}
 0x184   : > { %s3084_s14 = scalar_lea.hbm %s3613_s13, 1024  ;;  %s3088_s11 = scalar_lea.hbm %s3665_s6, 2048 }
 0x185   : > { %p3085_p4 = scmp.ne.s32.totalorder %s3613_s13, %s3084_s14  ;;  %p3089_p9 = scmp.lt.s32.totalorder %s3613_s13, %s3665_s6 }
 0x186   : > { %p3090_p10 = scmp.lt.s32.totalorder %s3088_s11, %s3084_s14 }
 0x187   : > { %p3086_p7 = pnand %p3085_p4, %p3208_p5 }
 0x188   : > { %p3091_p11 = por %p3090_p10, %p3089_p9 }
 0x189   : > { %p3087_p8 = pneg %p3086_p7 }
 0x18b   : > { %p3092_p12 = pnand %p3091_p11, %p3087_p8 }
 0x18d   : > { %3095 = shalt.err (!%p3092_p12)
}
 0x18e   : > { %s3133_s28 = smov 128   ;;  %s3134_s18 = smov 8  }
 0x18f   : > { %2933 = dma.vmem_to_hbm [thread:$0]  (%p3208_p5), %s3615_s9, 1024, %s3613_s13, %s3619_s25, %s3133_s28, %s3133_s28, %s3134_s18  }
 0x190 PF: > { %p2939_p13 = scmp.ge.s32.totalorder %s3130_s24, 2  ;;  %s2225_s12 = sand.u32 1, %s3118_s21  }
 0x191   : > { %s2226_s10 = scalar_lea.sflag [#allocation3], %s2225_s12 }
 0x192   : > { %p2936_p0 = pnand %p2939_p13, %p3212_p6 }
 0x194   : > { %p2937_p1 = pneg %p2936_p0 }
 0x196   : > { %3113 = dma.done.wait (%p2937_p1), %s2226_s10, 1024  }
 0x197   : > { %3115 = vsyncadd (%p2937_p1), %s2226_s10, 4294966272  ;;  %p16_p2 = scmp.ge.s32.totalorder %s3195_s27, 4   ;;  %s3678_s21 = smov %s3122_s22 }
 0x198   : > { %s3679_s22 = smov %s3126_s23  ;;  %s3680_s23 = smov %s3206_s30 }
 0x199   : > { %s3681_s24 = smov %s3195_s27  ;;  %18 = sbr.rel (!%p16_p2) target bundleno = 3 (0x3), region = 98 }
 0x19e   :  { %2231 = vsyncpa [#allocation3], 1 }
 0x19f   :  { %2233 = vsyncpa [#allocation3 + $0x1], 1 }

</bundles_post_ra>
